<compile_context>
chip_gen: v6e
topology: v6e:2x2x1
jax: 0.10.0
libtpu: 0.0.40
codegen_flags: <defaults>
</compile_context>

<pallas_src>
import functools

import jax
import jax.numpy as jnp
from jax.experimental import pallas as pl
from jax.experimental.pallas import tpu as pltpu

HIDDEN_SIZE = (128, 64)
SUBLANES = 8


def mlp_kernel(x_ref, w1_ref, b1_ref, w2_ref, b2_ref, w3_ref, b3_ref, o_ref):
    # Layer 1: bf16 x / bf16 W1 on the MXU, f32 accumulate; bias + ReLU on VPU
    # (free filler under the MXU slot).
    h = jnp.dot(x_ref[...], w1_ref[...], preferred_element_type=jnp.float32)
    h = jnp.maximum(h + b1_ref[...], 0.0)
    # Layer 2: cast hidden back to bf16 only for the matmul input.
    h = jnp.dot(h.astype(w2_ref.dtype), w2_ref[...],
                preferred_element_type=jnp.float32)
    h = jnp.maximum(h + b2_ref[...], 0.0)
    # Layer 3 (output head): no activation.
    out = jnp.dot(h.astype(w3_ref.dtype), w3_ref[...],
                  preferred_element_type=jnp.float32)
    o_ref[...] = (out + b3_ref[...]).astype(o_ref.dtype)


def _pick_block_b(batch):
    # Target a 2-step grid: even step count (keeps both v7x TensorCores busy
    # under dimension_semantics=("parallel",)) while keeping per-step overhead
    # negligible on single-TC v5e/v6e. Rounded up to a sublane multiple.
    half = (batch + 1) // 2
    return max(SUBLANES, ((half + SUBLANES - 1) // SUBLANES) * SUBLANES)


@functools.partial(jax.jit, static_argnames=("block_b",))
def dnn_forward(x, w1, b1, w2, b2, w3, b3, *, block_b=None):
    B, in_size = x.shape
    h1 = w1.shape[1]
    h2 = w2.shape[1]
    out_size = w3.shape[1]

    if block_b is None:
        block_b = _pick_block_b(B)
    if block_b > B:
        block_b = max(SUBLANES, ((B + SUBLANES - 1) // SUBLANES) * SUBLANES)
    grid = (pl.cdiv(B, block_b),)

    # bf16 activations/weights (MXU-native on v5e/v6e/v7x); biases stay f32 so
    # they add directly into the f32 accumulator. Output is f32.
    compute_dtype = jnp.bfloat16
    xc = x.astype(compute_dtype)
    w1c = w1.astype(compute_dtype)
    w2c = w2.astype(compute_dtype)
    w3c = w3.astype(compute_dtype)
    b1c = b1.astype(jnp.float32)
    b2c = b2.astype(jnp.float32)
    b3c = b3.astype(jnp.float32)

    def full(shape):
        # Weights/biases: constant index_map -> fetched once, VMEM-resident.
        return pl.BlockSpec(shape, lambda i: (0,) * len(shape))

    # Advisory cost estimate so XLA can schedule/overlap the custom call.
    flops = 2 * B * (in_size * h1 + h1 * h2 + h2 * out_size)
    param_elems = in_size * h1 + h1 * h2 + h2 * out_size
    bias_elems = h1 + h2 + out_size
    bytes_accessed = (
        2 * (B * in_size + param_elems)      # bf16 x + weights
        + 4 * (B * out_size + bias_elems)    # f32 output + biases
    )

    out = pl.pallas_call(
        mlp_kernel,
        out_shape=jax.ShapeDtypeStruct((B, out_size), jnp.float32),
        grid_spec=pltpu.PrefetchScalarGridSpec(
            num_scalar_prefetch=0,
            grid=grid,
            in_specs=[
                pl.BlockSpec((block_b, in_size), lambda i: (i, 0)),
                full(w1c.shape), full(b1c.shape),
                full(w2c.shape), full(b2c.shape),
                full(w3c.shape), full(b3c.shape),
            ],
            out_specs=pl.BlockSpec((block_b, out_size), lambda i: (i, 0)),
        ),
        compiler_params=pltpu.CompilerParams(
            dimension_semantics=("parallel",),
        ),
        cost_estimate=pl.CostEstimate(
            flops=flops, transcendentals=0, bytes_accessed=bytes_accessed
        ),
    )(xc, w1c, b1c, w2c, b2c, w3c, b3c)

    return out


def init_linear(key, fan_in, fan_out, dtype=jnp.float32):
    # Deterministic init mimicking torch.nn.Linear (uniform +/- 1/sqrt(fan_in)).
    kw, kb = jax.random.split(key)
    bound = 1.0 / jnp.sqrt(jnp.asarray(fan_in, dtype))
    w = jax.random.uniform(kw, (fan_in, fan_out), dtype, -bound, bound)
    b = jax.random.uniform(kb, (1, fan_out), dtype, -bound, bound)
    return w, b


def reference_forward(x, w1, b1, w2, b2, w3, b3):
    # Full-precision f32 reference for the module semantics.
    h = jnp.maximum(x @ w1 + b1, 0.0)
    h = jnp.maximum(h @ w2 + b2, 0.0)
    return h @ w3 + b3


if __name__ == "__main__":
    # Shapes consistent with the module: input width 16, hidden_size=(128, 64),
    # output width 8. Batch 2048 -> block_b=1024 -> 2 "parallel" grid steps
    # (both v7x TCs busy, minimal per-step overhead on v5e/v6e); total data is
    # tiny (~160 KB), weights stay VMEM-resident.
    batch, input_size, output_size = 2048, 16, 8
    dtype = jnp.float32

    key = jax.random.PRNGKey(0)
    kx, k1, k2, k3 = jax.random.split(key, 4)

    x = jax.random.normal(kx, (batch, input_size), dtype)
    w1, b1 = init_linear(k1, input_size, HIDDEN_SIZE[0], dtype)
    w2, b2 = init_linear(k2, HIDDEN_SIZE[0], HIDDEN_SIZE[1], dtype)
    w3, b3 = init_linear(k3, HIDDEN_SIZE[1], output_size, dtype)

    out = jax.block_until_ready(dnn_forward(x, w1, b1, w2, b2, w3, b3))

    ref = reference_forward(x, w1, b1, w2, b2, w3, b3)
    assert out.shape == (batch, output_size)
    # bf16 inputs/weights with f32 accumulation: loosened tolerance vs the
    # full-f32 reference.
    assert jnp.allclose(out, ref, atol=3e-2, rtol=3e-2), "mismatch vs reference"

    print("KERNEL_OK")
</pallas_src>

<mosaic_0001>
module attributes {stable_mosaic.version = 11 : i64} {
  func.func @mlp_kernel(%arg0: i32, %arg1: memref<1024x16xbf16, #tpu.memory_space<vmem>>, %arg2: memref<16x128xbf16, #tpu.memory_space<vmem>>, %arg3: memref<1x128xf32, #tpu.memory_space<vmem>>, %arg4: memref<128x64xbf16, #tpu.memory_space<vmem>>, %arg5: memref<1x64xf32, #tpu.memory_space<vmem>>, %arg6: memref<64x8xbf16, #tpu.memory_space<vmem>>, %arg7: memref<1x8xf32, #tpu.memory_space<vmem>>, %arg8: memref<1024x8xf32, #tpu.memory_space<vmem>>) attributes {dimension_semantics = [#tpu.dimension_semantics<parallel>], iteration_bounds = array<i64: 2>, scalar_prefetch = 0 : i64, scratch_operands = 0 : i64, tpu.core_type = #tpu.core_type<tc>, window_params = [{transform_indices = @transform_0, window_bounds = array<i64: 1024, 16>}, {pipeline_mode = #tpu.pipeline_mode<synchronous>, transform_indices = @transform_1, window_bounds = array<i64: 16, 128>}, {pipeline_mode = #tpu.pipeline_mode<synchronous>, transform_indices = @transform_2, window_bounds = array<i64: 1, 128>}, {pipeline_mode = #tpu.pipeline_mode<synchronous>, transform_indices = @transform_3, window_bounds = array<i64: 128, 64>}, {pipeline_mode = #tpu.pipeline_mode<synchronous>, transform_indices = @transform_4, window_bounds = array<i64: 1, 64>}, {pipeline_mode = #tpu.pipeline_mode<synchronous>, transform_indices = @transform_5, window_bounds = array<i64: 64, 8>}, {pipeline_mode = #tpu.pipeline_mode<synchronous>, transform_indices = @transform_6, window_bounds = array<i64: 1, 8>}, {transform_indices = @transform_7, window_bounds = array<i64: 1024, 8>}]} {
    %c0 = arith.constant 0 : index
    %c0_0 = arith.constant 0 : index
    %0 = vector.load %arg1[%c0, %c0_0] : memref<1024x16xbf16, #tpu.memory_space<vmem>>, vector<1024x16xbf16>
    %c0_1 = arith.constant 0 : index
    %c0_2 = arith.constant 0 : index
    %1 = vector.load %arg2[%c0_1, %c0_2] : memref<16x128xbf16, #tpu.memory_space<vmem>>, vector<16x128xbf16>
    %cst = arith.constant dense<0.000000e+00> : vector<1024x128xf32>
    %2 = tpu.matmul %0, %1, %cst {dimension_numbers = #tpu.dot_dimension_numbers<[1], [0], [0], [1], [0, 0, 1, 1], [], []>} : vector<1024x16xbf16>, vector<16x128xbf16>, vector<1024x128xf32> -> vector<1024x128xf32>
    %c0_3 = arith.constant 0 : index
    %c0_4 = arith.constant 0 : index
    %3 = vector.load %arg3[%c0_3, %c0_4] : memref<1x128xf32, #tpu.memory_space<vmem>>, vector<1x128xf32>
    %4 = vector.broadcast %3 : vector<1x128xf32> to vector<1024x128xf32>
    %5 = arith.addf %2, %4 : vector<1024x128xf32>
    %cst_5 = arith.constant 0.000000e+00 : f32
    %6 = vector.broadcast %cst_5 : f32 to vector<1024x128xf32>
    %7 = arith.maximumf %5, %6 : vector<1024x128xf32>
    %8 = arith.truncf %7 : vector<1024x128xf32> to vector<1024x128xbf16>
    %c0_6 = arith.constant 0 : index
    %c0_7 = arith.constant 0 : index
    %9 = vector.load %arg4[%c0_6, %c0_7] : memref<128x64xbf16, #tpu.memory_space<vmem>>, vector<128x64xbf16>
    %cst_8 = arith.constant dense<0.000000e+00> : vector<1024x64xf32>
    %10 = tpu.matmul %8, %9, %cst_8 {dimension_numbers = #tpu.dot_dimension_numbers<[1], [0], [0], [1], [0, 0, 1, 1], [], []>} : vector<1024x128xbf16>, vector<128x64xbf16>, vector<1024x64xf32> -> vector<1024x64xf32>
    %c0_9 = arith.constant 0 : index
    %c0_10 = arith.constant 0 : index
    %11 = vector.load %arg5[%c0_9, %c0_10] : memref<1x64xf32, #tpu.memory_space<vmem>>, vector<1x64xf32>
    %12 = vector.broadcast %11 : vector<1x64xf32> to vector<1024x64xf32>
    %13 = arith.addf %10, %12 : vector<1024x64xf32>
    %cst_11 = arith.constant 0.000000e+00 : f32
    %14 = vector.broadcast %cst_11 : f32 to vector<1024x64xf32>
    %15 = arith.maximumf %13, %14 : vector<1024x64xf32>
    %16 = arith.truncf %15 : vector<1024x64xf32> to vector<1024x64xbf16>
    %c0_12 = arith.constant 0 : index
    %c0_13 = arith.constant 0 : index
    %17 = vector.load %arg6[%c0_12, %c0_13] : memref<64x8xbf16, #tpu.memory_space<vmem>>, vector<64x8xbf16>
    %cst_14 = arith.constant dense<0.000000e+00> : vector<1024x8xf32>
    %18 = tpu.matmul %16, %17, %cst_14 {dimension_numbers = #tpu.dot_dimension_numbers<[1], [0], [0], [1], [0, 0, 1, 1], [], []>} : vector<1024x64xbf16>, vector<64x8xbf16>, vector<1024x8xf32> -> vector<1024x8xf32>
    %c0_15 = arith.constant 0 : index
    %c0_16 = arith.constant 0 : index
    %19 = vector.load %arg7[%c0_15, %c0_16] : memref<1x8xf32, #tpu.memory_space<vmem>>, vector<1x8xf32>
    %20 = vector.broadcast %19 : vector<1x8xf32> to vector<1024x8xf32>
    %21 = arith.addf %18, %20 : vector<1024x8xf32>
    %c0_17 = arith.constant 0 : index
    %c0_18 = arith.constant 0 : index
    %22 = vector.load %arg8[%c0_17, %c0_18] : memref<1024x8xf32, #tpu.memory_space<vmem>>, vector<1024x8xf32>
    tpu.vector_store %arg8[%c0_17, %c0_18], %21 {strides = array<i32>} : memref<1024x8xf32, #tpu.memory_space<vmem>>, vector<1024x8xf32>,
    return
  }
  func.func @transform_0(%arg0: i32) -> (i32, i32) {
    %c0_i32 = arith.constant 0 : i32
    %c0_i32_0 = arith.constant 0 : i32
    return %arg0, %c0_i32 : i32, i32
  }
  func.func @transform_1(%arg0: i32) -> (i32, i32) {
    %c0_i32 = arith.constant 0 : i32
    %c0_i32_0 = arith.constant 0 : i32
    %c0_i32_1 = arith.constant 0 : i32
    return %c0_i32, %c0_i32_0 : i32, i32
  }
  func.func @transform_2(%arg0: i32) -> (i32, i32) {
    %c0_i32 = arith.constant 0 : i32
    %c0_i32_0 = arith.constant 0 : i32
    %c0_i32_1 = arith.constant 0 : i32
    return %c0_i32, %c0_i32_0 : i32, i32
  }
  func.func @transform_3(%arg0: i32) -> (i32, i32) {
    %c0_i32 = arith.constant 0 : i32
    %c0_i32_0 = arith.constant 0 : i32
    %c0_i32_1 = arith.constant 0 : i32
    return %c0_i32, %c0_i32_0 : i32, i32
  }
  func.func @transform_4(%arg0: i32) -> (i32, i32) {
    %c0_i32 = arith.constant 0 : i32
    %c0_i32_0 = arith.constant 0 : i32
    %c0_i32_1 = arith.constant 0 : i32
    return %c0_i32, %c0_i32_0 : i32, i32
  }
  func.func @transform_5(%arg0: i32) -> (i32, i32) {
    %c0_i32 = arith.constant 0 : i32
    %c0_i32_0 = arith.constant 0 : i32
    %c0_i32_1 = arith.constant 0 : i32
    return %c0_i32, %c0_i32_0 : i32, i32
  }
  func.func @transform_6(%arg0: i32) -> (i32, i32) {
    %c0_i32 = arith.constant 0 : i32
    %c0_i32_0 = arith.constant 0 : i32
    %c0_i32_1 = arith.constant 0 : i32
    return %c0_i32, %c0_i32_0 : i32, i32
  }
  func.func @transform_7(%arg0: i32) -> (i32, i32) {
    %c0_i32 = arith.constant 0 : i32
    %c0_i32_0 = arith.constant 0 : i32
    return %arg0, %c0_i32 : i32, i32
  }
}

</mosaic_0001>

<bundles_post_ra>
// kernel: dnn_forward.1
= control target key start
LH: loop header
LB: loop body
LE: loop exit
PB: predicated region body
PF: predicated region fallthrough
CT: control target
= control target key end

     0   :  { %s4417_s24 = smov 0   ;;  %s5530_s0 = inlined_call_operand.vmem [shape: bf16[2048,16], index: 0, kind: input, shape index: {}]   ;;  %s5531_s1 = inlined_call_operand.vmem [shape: bf16[16,128], index: 1, kind: input, shape index: {}]   ;;  %s5532_s2 = inlined_call_operand.vmem [shape: f32[1,128], index: 2, kind: input, shape index: {}]   ;;  %s5533_s3 = inlined_call_operand.vmem [shape: bf16[128,64], index: 3, kind: input, shape index: {}]   ;;  %s5534_s4 = inlined_call_operand.vmem [shape: f32[1,64], index: 4, kind: input, shape index: {}]   ;;  %s5535_s5 = inlined_call_operand.vmem [shape: bf16[64,8], index: 5, kind: input, shape index: {}]   ;;  %s5536_s6 = inlined_call_operand.vmem [shape: f32[1,8], index: 6, kind: input, shape index: {}]   ;;  %s5537_s7 = inlined_call_operand.vmem [shape: f32[2048,8], index: 7, kind: output, shape index: {}]  }
   0x1 LB: > { %s3446_s25 = sadd.s32 4294967295, %s4375_s24   ;;  %p3450_p0 = scmp.ge.s32.totalorder %s4375_s24, 1  ;;  %s4375_s24 = sphi %s4417_s24, %s17_s24  }
   0x2   : > { %p238_p1 = scmp.lt.s32.totalorder %s4375_s24, 3 }
   0x4   : > { %p239_p2 = pnand %p3450_p0, %p238_p1 }
   0x5   : > { %s3451_s28 = sshll.u32 (!%p239_p2), %s3446_s25, 7 }
   0x6   : > { %242 = sbr.rel (%p239_p2) target bundleno = 878 (0x36e), region = 48  ;;  %p271_p3 = scmp.lt.s32.totalorder (!%p239_p2), %s3451_s28, 255 }
   0xb   : > { %v4290_v0 = vld [vmem:[%s5531_s1] sm:$0xff]   ;;  %v4313_v1 = vld [vmem:[%s5533_s3 + $0x38] sm:$0xff]   ;;  %s5539_s28 = smov (!%p271_p3, %s3451_s28), 255  ;;  %vm746_vm0 = vcmask 130048   ;;  %v4322_v10 = vld [vmem:[%s5533_s3 + $0x30] sm:$0xff]   ;;  %vm2523_vm1 = vcmask 523264  }
   0xc   : > { %3870 = vmatprep.subr.bf16.mxu0 %v4290_v0  ;;  %4280 = vmatprep.subr.bf16.mxu1 %v4290_v0  ;;  %s3452_s8 = sshll.u32 %s5539_s28, 2  ;;  %v4331_v15 = vld [vmem:[%s5533_s3 + $0x28] sm:$0xff]   ;;  %v4340_v18 = vld [vmem:[%s5533_s3 + $0x20] sm:$0xff]   ;;  %v4345_v21 = vld [vmem:[%s5533_s3 + $0x18] sm:$0xff]   ;;  %s3454_s19 = sshll.u32 %s5539_s28, 3  ;;  %vm3261_vm2 = vcmask 64512  }
   0xd   : > { %3871 = vmatpush3.bf16.msra.mxu0 %v4290_v0  ;;  %4281 = vmatpush3.bf16.msra.mxu1 %v4290_v0  ;;  %s4437_s11 = scalar_lea.vmem %s5530_s0, %s3452_s8  ;;  %v4350_v32 = vld [vmem:[%s5533_s3 + $0x10] sm:$0xff]   ;;  %v4355_v36 = vld [vmem:[%s5533_s3 + $0x8] sm:$0xff]   ;;  %v4360_v40 = vld [vmem:[%s5533_s3] sm:$0xff]   ;;  %s5096_s28 = scalar_lea.vmem %s5537_s7, %s3454_s19 }
   0xe   : > { %4000 = vmatprep.subr.bf16.mxu1 %v4313_v1  ;;  %v4291_v2 = vld [vmem:[%s4437_s11] sm:$0xff]   ;;  %v4292_v3 = vld [vmem:[%s4437_s11 + $0x8] sm:$0xff]   ;;  %v4293_v4 = vld [vmem:[%s4437_s11 + $0x10] sm:$0xff]  }
   0xf   : > { %3872 = vmatprep.mubr.msk.bf16.mxu0 %vm746_vm0, %v4291_v2  ;;  %v4294_v5 = vld [vmem:[%s4437_s11 + $0x18] sm:$0xff]   ;;  %v4295_v6 = vld [vmem:[%s4437_s11 + $0x20] sm:$0xff]   ;;  %v4296_v7 = vld [vmem:[%s4437_s11 + $0x28] sm:$0xff]  }
  0x10   : > { %3873 = vmatmul.mubr.msk.bf16.vlgmr.msra.gmra.mxu0 %vm746_vm0, %v4292_v3  ;;  %v4297_v8 = vld [vmem:[%s4437_s11 + $0x30] sm:$0xff]   ;;  %v4310_v9 = vld [vmem:[%s4437_s11 + $0x100] sm:$0xff]   ;;  %v4312_v11 = vld [vmem:[%s4437_s11 + $0x108] sm:$0xff]  }
  0x11   : > { %3876 = vmatprep.mubr.msk.bf16.mxu0 %vm746_vm0, %v4293_v4  ;;  %3936 = vmatprep.mubr.msk.bf16.mxu1 %vm746_vm0, %v4310_v9  ;;  %v4298_v12 = vld [vmem:[%s4437_s11 + $0x38] sm:$0xff]   ;;  %v4315_v13 = vld [vmem:[%s4437_s11 + $0x110] sm:$0xff]   ;;  %v4299_v14 = vld [vmem:[%s4437_s11 + $0x40] sm:$0xff]  }
  0x12   : > { %3937 = vmatmul.mubr.msk.bf16.vlgmr.msra.gmra.mxu1 %vm746_vm0, %v4312_v11  ;;  %v4317_v16 = vld [vmem:[%s4437_s11 + $0x118] sm:$0xff]   ;;  %v4319_v17 = vld [vmem:[%s4437_s11 + $0x120] sm:$0xff]   ;;  %v4300_v19 = vld [vmem:[%s4437_s11 + $0x48] sm:$0xff]  }
  0x13   : > { %4001 = vmatpush3.bf16.msra.mxu1 %v4313_v1  ;;  %3940 = vmatprep.mubr.msk.bf16.mxu1 %vm746_vm0, %v4315_v13  ;;  %v4301_v20 = vld [vmem:[%s4437_s11 + $0x50] sm:$0xff]   ;;  %v4321_v22 = vld [vmem:[%s4437_s11 + $0x128] sm:$0xff]   ;;  %v4302_v24 = vld [vmem:[%s4437_s11 + $0x58] sm:$0xff]  }
  0x14   : > { %4002 = vmatprep.subr.bf16.mxu1 %v4322_v10  ;;  %v4324_v23 = vld [vmem:[%s4437_s11 + $0x130] sm:$0xff]   ;;  %v4303_v25 = vld [vmem:[%s4437_s11 + $0x60] sm:$0xff]   ;;  %v4326_v26 = vld [vmem:[%s4437_s11 + $0x138] sm:$0xff]  }
  0x15   : > { %v4328_v27 = vld [vmem:[%s4437_s11 + $0x140] sm:$0xff]   ;;  %v4304_v28 = vld [vmem:[%s4437_s11 + $0x68] sm:$0xff]   ;;  %v4305_v29 = vld [vmem:[%s4437_s11 + $0x70] sm:$0xff]  }
  0x16   : > { %v4330_v30 = vld [vmem:[%s4437_s11 + $0x148] sm:$0xff]   ;;  %v4333_v31 = vld [vmem:[%s4437_s11 + $0x150] sm:$0xff]   ;;  %v4306_v33 = vld [vmem:[%s4437_s11 + $0x78] sm:$0xff]  }
  0x17   : > { %4003 = vmatpush3.bf16.msra.mxu1 %v4322_v10  ;;  %v4307_v34 = vld [vmem:[%s4437_s11 + $0x80] sm:$0xff]   ;;  %v4335_v35 = vld [vmem:[%s4437_s11 + $0x158] sm:$0xff]   ;;  %v4308_v38 = vld [vmem:[%s4437_s11 + $0x88] sm:$0xff]  }
  0x18   : > { %3877 = vmatmul.mubr.msk.bf16.gmra.mxu0 %vm746_vm0, %v4294_v5  ;;  %4004 = vmatprep.subr.bf16.mxu1 %v4331_v15  ;;  %v4337_v37 = vld [vmem:[%s4437_s11 + $0x160] sm:$0xff]   ;;  %v4309_v39 = vld [vmem:[%s4437_s11 + $0x90] sm:$0xff]   ;;  %v4339_v41 = vld [vmem:[%s4437_s11 + $0x168] sm:$0xff]  }
  0x19   : > { %3880 = vmatprep.mubr.msk.bf16.mxu0 %vm746_vm0, %v4295_v6  ;;  %v4341_v42 = vld [vmem:[%s4437_s11 + $0x170] sm:$0xff]   ;;  %v4311_v43 = vld [vmem:[%s4437_s11 + $0x98] sm:$0xff]   ;;  %v4314_v44 = vld [vmem:[%s4437_s11 + $0xa0] sm:$0xff]  }
  0x1a   : > { %3941 = vmatmul.mubr.msk.bf16.gmra.mxu1 %vm746_vm0, %v4317_v16  ;;  %v4342_v45 = vld [vmem:[%s4437_s11 + $0x178] sm:$0xff]   ;;  %v4343_v46 = vld [vmem:[%s4437_s11 + $0x180] sm:$0xff]   ;;  %v4316_v47 = vld [vmem:[%s4437_s11 + $0xa8] sm:$0xff]  }
  0x1b   : > { %3944 = vmatprep.mubr.msk.bf16.mxu1 %vm746_vm0, %v4319_v17  ;;  %4005 = vmatpush3.bf16.msra.mxu1 %v4331_v15  ;;  %v4318_v48 = vld [vmem:[%s4437_s11 + $0xb0] sm:$0xff]   ;;  %v4344_v49 = vld [vmem:[%s4437_s11 + $0x188] sm:$0xff]   ;;  %v4320_v51 = vld [vmem:[%s4437_s11 + $0xb8] sm:$0xff]  }
  0x1c   : > { %4006 = vmatprep.subr.bf16.mxu1 %v4340_v18  ;;  %v4346_v50 = vld [vmem:[%s4437_s11 + $0x190] sm:$0xff]   ;;  %v4323_v52 = vld [vmem:[%s4437_s11 + $0xc0] sm:$0xff]   ;;  %v4347_v53 = vld [vmem:[%s4437_s11 + $0x198] sm:$0xff]  }
  0x1d   : > { %v4348_v54 = vld [vmem:[%s4437_s11 + $0x1a0] sm:$0xff]   ;;  %v4325_v55 = vld [vmem:[%s4437_s11 + $0xc8] sm:$0xff]   ;;  %v4327_v56 = vld [vmem:[%s4437_s11 + $0xd0] sm:$0xff]  }
  0x1e   : > { %v4349_v57 = vld [vmem:[%s4437_s11 + $0x1a8] sm:$0xff]   ;;  %v4351_v58 = vld [vmem:[%s4437_s11 + $0x1b0] sm:$0xff]   ;;  %v4329_v59 = vld [vmem:[%s4437_s11 + $0xd8] sm:$0xff]  }
  0x1f   : > { %4007 = vmatpush3.bf16.msra.mxu1 %v4340_v18  ;;  %v4332_v60 = vld [vmem:[%s4437_s11 + $0xe0] sm:$0xff]   ;;  %v4352_v61 = vld [vmem:[%s4437_s11 + $0x1b8] sm:$0xff]   ;;  %v4334_v63 = vld [vmem:[%s4437_s11 + $0xe8] sm:$0xff]  }
  0x20   : > { %3881 = vmatmul.mubr.msk.bf16.gmra.mxu0 %vm746_vm0, %v4296_v7  ;;  %4008 = vmatprep.subr.bf16.mxu1 %v4345_v21  ;;  %v4353_v62 = vld [vmem:[%s4437_s11 + $0x1c0] sm:$0xff]   ;;  %v4336_v0 = vld [vmem:[%s4437_s11 + $0xf0] sm:$0xff]   ;;  %v4354_v1 = vld [vmem:[%s4437_s11 + $0x1c8] sm:$0xff]  }
  0x21   : > { %3884 = vmatprep.mubr.msk.bf16.mxu0 %vm746_vm0, %v4297_v8  ;;  %v4356_v2 = vld [vmem:[%s4437_s11 + $0x1d0] sm:$0xff]   ;;  %v4338_v3 = vld [vmem:[%s4437_s11 + $0xf8] sm:$0xff]   ;;  %v4358_v5 = vld [vmem:[%s4437_s11 + $0x1e0] sm:$0xff]  }
  0x22   : > { %3945 = vmatmul.mubr.msk.bf16.gmra.mxu1 %vm746_vm0, %v4321_v22  ;;  %v4357_v4 = vld [vmem:[%s4437_s11 + $0x1d8] sm:$0xff]   ;;  %v4359_v6 = vld [vmem:[%s4437_s11 + $0x1e8] sm:$0xff]   ;;  %v4361_v7 = vld [vmem:[%s4437_s11 + $0x1f0] sm:$0xff]  }
  0x23   : > { %3948 = vmatprep.mubr.msk.bf16.mxu1 %vm746_vm0, %v4324_v23  ;;  %4009 = vmatpush3.bf16.msra.mxu1 %v4345_v21  ;;  %v4362_v8 = vld [vmem:[%s4437_s11 + $0x1f8] sm:$0xff]   ;;  %v4364_v10 = vld [vmem:[%s5535_s5 + $0x10] sm:$0xff]   ;;  %v4597_v13 = vld [vmem:[%s5532_s2] ss:$0 sm:$0xff] }
  0x24   : > { %4010 = vmatprep.subr.bf16.mxu1 %v4350_v32  ;;  %v4363_v9 = vld [vmem:[%s5535_s5 + $0x18] sm:$0xff]  }
  0x25   : > { %4144 = vmatprep.subr.bf16.mxu0 %v4363_v9 }
  0x26   : > { %4145 = vmatpush3.bf16.msra.mxu0 %v4363_v9 }
  0x27   : > { %4011 = vmatpush3.bf16.msra.mxu1 %v4350_v32  ;;  %4146 = vmatprep.subr.bf16.mxu0 %v4364_v10 }
  0x28   : > { %3885 = vmatmul.mubr.msk.bf16.gmra.mxu0 %vm746_vm0, %v4298_v12  ;;  %4012 = vmatprep.subr.bf16.mxu1 %v4355_v36 }
  0x29   : > { %3888 = vmatprep.mubr.msk.bf16.mxu0 %vm746_vm0, %v4299_v14 }
  0x2a   : > { %3949 = vmatmul.mubr.msk.bf16.gmra.mxu1 %vm746_vm0, %v4326_v26  ;;  %4147 = vmatpush3.bf16.msra.mxu0 %v4364_v10 }
  0x2b   : > { %3952 = vmatprep.mubr.msk.bf16.mxu1 %vm746_vm0, %v4328_v27  ;;  %4013 = vmatpush3.bf16.msra.mxu1 %v4355_v36 }
  0x2c   : > { %4014 = vmatprep.subr.bf16.mxu1 %v4360_v40 }
  0x2f   : > { %4015 = vmatpush3.bf16.msra.mxu1 %v4360_v40 }
  0x30   : > { %3889 = vmatmul.mubr.msk.bf16.gmra.mxu0 %vm746_vm0, %v4300_v19 }
  0x31   : > { %3892 = vmatprep.mubr.msk.bf16.mxu0 %vm746_vm0, %v4301_v20 }
  0x32   : > { %3953 = vmatmul.mubr.msk.bf16.gmra.mxu1 %vm746_vm0, %v4330_v30 }
  0x33   : > { %3956 = vmatprep.mubr.msk.bf16.mxu1 %vm746_vm0, %v4333_v31 }
  0x38   : > { %3893 = vmatmul.mubr.msk.bf16.gmra.mxu0 %vm746_vm0, %v4302_v24 }
  0x39   : > { %3896 = vmatprep.mubr.msk.bf16.mxu0 %vm746_vm0, %v4303_v25 }
  0x3a   : > { %3957 = vmatmul.mubr.msk.bf16.gmra.mxu1 %vm746_vm0, %v4335_v35 }
  0x3b   : > { %3960 = vmatprep.mubr.msk.bf16.mxu1 %vm746_vm0, %v4337_v37 }
  0x40   : > { %3897 = vmatmul.mubr.msk.bf16.gmra.mxu0 %vm746_vm0, %v4304_v28 }
  0x41   : > { %3900 = vmatprep.mubr.msk.bf16.mxu0 %vm746_vm0, %v4305_v29 }
  0x42   : > { %3961 = vmatmul.mubr.msk.bf16.gmra.mxu1 %vm746_vm0, %v4339_v41 }
  0x43   : > { %3964 = vmatprep.mubr.msk.bf16.mxu1 %vm746_vm0, %v4341_v42 }
  0x48   : > { %3901 = vmatmul.mubr.msk.bf16.gmra.mxu0 %vm746_vm0, %v4306_v33 }
  0x49   : > { %3904 = vmatprep.mubr.msk.bf16.mxu0 %vm746_vm0, %v4307_v34 }
  0x4a   : > { %3965 = vmatmul.mubr.msk.bf16.gmra.mxu1 %vm746_vm0, %v4342_v45 }
  0x4b   : > { %3968 = vmatprep.mubr.msk.bf16.mxu1 %vm746_vm0, %v4343_v46 }
  0x50   : > { %3905 = vmatmul.mubr.msk.bf16.gmra.mxu0 %vm746_vm0, %v4308_v38 }
  0x51   : > { %3908 = vmatprep.mubr.msk.bf16.mxu0 %vm746_vm0, %v4309_v39 }
  0x52   : > { %3969 = vmatmul.mubr.msk.bf16.gmra.mxu1 %vm746_vm0, %v4344_v49 }
  0x53   : > { %3972 = vmatprep.mubr.msk.bf16.mxu1 %vm746_vm0, %v4346_v50  ;;  %v4365_v50 = vld [vmem:[%s5535_s5 + $0x8] sm:$0xff]  }
  0x54   : > { %4148 = vmatprep.subr.bf16.mxu0 %v4365_v50 }
  0x55   : > { %4149 = vmatpush3.bf16.msra.mxu0 %v4365_v50 }
  0x58   : > { %3909 = vmatmul.mubr.msk.bf16.gmra.mxu0 %vm746_vm0, %v4311_v43 }
  0x59   : > { %3912 = vmatprep.mubr.msk.bf16.mxu0 %vm746_vm0, %v4314_v44 }
  0x5a   : > { %3973 = vmatmul.mubr.msk.bf16.gmra.mxu1 %vm746_vm0, %v4347_v53 }
  0x5b   : > { %3976 = vmatprep.mubr.msk.bf16.mxu1 %vm746_vm0, %v4348_v54 }
  0x60   : > { %3913 = vmatmul.mubr.msk.bf16.gmra.mxu0 %vm746_vm0, %v4316_v47 }
  0x61   : > { %3916 = vmatprep.mubr.msk.bf16.mxu0 %vm746_vm0, %v4318_v48 }
  0x62   : > { %3977 = vmatmul.mubr.msk.bf16.gmra.mxu1 %vm746_vm0, %v4349_v57 }
  0x63   : > { %3980 = vmatprep.mubr.msk.bf16.mxu1 %vm746_vm0, %v4351_v58 }
  0x68   : > { %3917 = vmatmul.mubr.msk.bf16.gmra.mxu0 %vm746_vm0, %v4320_v51 }
  0x69   : > { %3920 = vmatprep.mubr.msk.bf16.mxu0 %vm746_vm0, %v4323_v52 }
  0x6a   : > { %3981 = vmatmul.mubr.msk.bf16.gmra.mxu1 %vm746_vm0, %v4352_v61 }
  0x6b   : > { %3984 = vmatprep.mubr.msk.bf16.mxu1 %vm746_vm0, %v4353_v62 }
  0x70   : > { %3921 = vmatmul.mubr.msk.bf16.gmra.mxu0 %vm746_vm0, %v4325_v55 }
  0x71   : > { %3924 = vmatprep.mubr.msk.bf16.mxu0 %vm746_vm0, %v4327_v56 }
  0x72   : > { %3985 = vmatmul.mubr.msk.bf16.gmra.mxu1 %vm746_vm0, %v4354_v1 }
  0x73   : > { %3988 = vmatprep.mubr.msk.bf16.mxu1 %vm746_vm0, %v4356_v2 }
  0x78   : > { %3925 = vmatmul.mubr.msk.bf16.gmra.mxu0 %vm746_vm0, %v4329_v59 }
  0x79   : > { %3928 = vmatprep.mubr.msk.bf16.mxu0 %vm746_vm0, %v4332_v60 }
  0x7a   : > { %3989 = vmatmul.mubr.msk.bf16.gmra.mxu1 %vm746_vm0, %v4357_v4 }
  0x7b   : > { %3992 = vmatprep.mubr.msk.bf16.mxu1 %vm746_vm0, %v4358_v5 }
  0x80   : > { %3929 = vmatmul.mubr.msk.bf16.gmra.mxu0 %vm746_vm0, %v4334_v63 }
  0x81   : > { %3932 = vmatprep.mubr.msk.bf16.mxu0 %vm746_vm0, %v4336_v0 }
  0x82   : > { %3993 = vmatmul.mubr.msk.bf16.gmra.mxu1 %vm746_vm0, %v4359_v6 }
  0x83   : > { %3996 = vmatprep.mubr.msk.bf16.mxu1 %vm746_vm0, %v4361_v7 }
  0x88   : > { %3933 = vmatmul.mubr.msk.bf16.gmra.mxu0 %vm746_vm0, %v4338_v3 }
  0x8a   : > { %3997 = vmatmul.mubr.msk.bf16.gmra.mxu1 %vm746_vm0, %v4362_v8 }
  0xd0   : > { %v3874_v11 = vpop.f32.mrf.mxu0 }
  0xd1   : > { %v982_v17 = vadd.f32 %v3874_v11, %v4597_v13 }
  0xd2   : > { %v973_v12 = vpop.f32.mrf.mxu0  ;;  %v4607_v43 = vpop.f32.mrf.mxu1 }
  0xd3   : > { %v974_v15 = vadd.f32 %v4597_v13, %v973_v12  ;;  %v1486_v24 = vmax.f32 %v982_v17, 0.0 }
  0xd4   : > { %v3875_v14 = vpop.f32.mrf.mxu0  ;;  %v4612_v48 = vpop.f32.mrf.mxu1 }
  0xd5   : > { %v985_v16 = vadd.f32 %v3875_v14, %v4597_v13  ;;  %v1484_v22 = vmax.f32 %v974_v15, 0.0 }
  0xd6   : > { %v976_v18 = vpop.f32.mrf.mxu0  ;;  %v4618_v53 = vpop.f32.mrf.mxu1 }
  0xd7   : > { %v977_v19 = vadd.f32 %v4597_v13, %v976_v18  ;;  %v1487_v20 = vmax.f32 %v985_v16, 0.0 }
  0xd8   : > { %v3878_v21 = vpop.f32.mrf.mxu0  ;;  %v4620_v58 = vpop.f32.mrf.mxu1 }
  0xd9   : > { %v1485_v23 = vmax.f32 %v977_v19, 0.0  ;;  %v1613_v27 = vpack.c.bf16 %v1487_v20, %v1486_v24  ;;  %v998_v31 = vadd.f32 %v3878_v21, %v4597_v13 }
  0xda   : > { %v989_v25 = vpop.f32.mrf.mxu0  ;;  %v4622_v62 = vpop.f32.mrf.mxu1 }
  0xdb   : > { %v1612_v26 = vpack.c.bf16 %v1485_v23, %v1484_v22  ;;  %v990_v29 = vadd.f32 %v4597_v13, %v989_v25  ;;  %v1490_v38 = vmax.f32 %v998_v31, 0.0 }
  0xdc   : > { %v3879_v28 = vpop.f32.mrf.mxu0  ;;  %v4627_v3 = vpop.f32.mrf.mxu1 }
  0xdd   : > { %v1001_v30 = vadd.f32 %v3879_v28, %v4597_v13  ;;  %4016 = vmatprep.mubr.bf16.mxu1 %v1612_v26  ;;  %v1488_v36 = vmax.f32 %v990_v29, 0.0 }
  0xde   : > { %v992_v32 = vpop.f32.mrf.mxu0  ;;  %4017 = vmatmul.mubr.bf16.vlgmr.msra.gmra.mxu1 %v1613_v27  ;;  %v4630_v7 = vpop.f32.mrf.mxu1 }
  0xdf   : > { %v993_v33 = vadd.f32 %v4597_v13, %v992_v32  ;;  %v1491_v34 = vmax.f32 %v1001_v30, 0.0 }
  0xe0   : > { %v3882_v35 = vpop.f32.mrf.mxu0  ;;  %v4632_v12 = vpop.f32.mrf.mxu1 }
  0xe1   : > { %v1489_v37 = vmax.f32 %v993_v33, 0.0  ;;  %v1615_v41 = vpack.c.bf16 %v1491_v34, %v1490_v38  ;;  %v1014_v46 = vadd.f32 %v3882_v35, %v4597_v13 }
  0xe2   : > { %v1005_v39 = vpop.f32.mrf.mxu0  ;;  %v4634_v17 = vpop.f32.mrf.mxu1 }
  0xe3   : > { %v1614_v40 = vpack.c.bf16 %v1489_v37, %v1488_v36  ;;  %v1006_v44 = vadd.f32 %v4597_v13, %v1005_v39  ;;  %v1494_v56 = vmax.f32 %v1014_v46, 0.0 }
  0xe4   : > { %v3883_v42 = vpop.f32.mrf.mxu0  ;;  %v4639_v22 = vpop.f32.mrf.mxu1 }
  0xe5   : > { %v1017_v45 = vadd.f32 %v3883_v42, %v4597_v13  ;;  %4020 = vmatprep.mubr.bf16.mxu1 %v1614_v40  ;;  %v1492_v54 = vmax.f32 %v1006_v44, 0.0 }
  0xe6   : > { %v1008_v47 = vpop.f32.mrf.mxu0  ;;  %4021 = vmatmul.mubr.bf16.gmra.mxu1 %v1615_v41  ;;  %v4642_v26 = vpop.f32.mrf.mxu1 }
  0xe7   : > { %v1009_v49 = vadd.f32 %v4597_v13, %v1008_v47  ;;  %v1495_v51 = vmax.f32 %v1017_v45, 0.0 }
  0xe8   : > { %v3886_v52 = vpop.f32.mrf.mxu0  ;;  %v4644_v31 = vpop.f32.mrf.mxu1 }
  0xe9   : > { %v1493_v55 = vmax.f32 %v1009_v49, 0.0  ;;  %v1617_v60 = vpack.c.bf16 %v1495_v51, %v1494_v56  ;;  %v1030_v1 = vadd.f32 %v3886_v52, %v4597_v13 }
  0xea   : > { %v1021_v57 = vpop.f32.mrf.mxu0  ;;  %v4646_v35 = vpop.f32.mrf.mxu1 }
  0xeb   : > { %v1616_v59 = vpack.c.bf16 %v1493_v55, %v1492_v54  ;;  %v1022_v63 = vadd.f32 %v4597_v13, %v1021_v57  ;;  %v1498_v10 = vmax.f32 %v1030_v1, 0.0  ;;  %v4366_v1 = vld [vmem:[%s5535_s5] sm:$0xff]  }
  0xec   : > { %v3887_v61 = vpop.f32.mrf.mxu0  ;;  %v4651_v40 = vpop.f32.mrf.mxu1  ;;  %4150 = vmatprep.subr.bf16.mxu0 %v4366_v1 }
  0xed   : > { %v1033_v0 = vadd.f32 %v3887_v61, %v4597_v13  ;;  %4024 = vmatprep.mubr.bf16.mxu1 %v1616_v59  ;;  %v1496_v8 = vmax.f32 %v1022_v63, 0.0  ;;  %4151 = vmatpush3.bf16.msra.mxu0 %v4366_v1 }
  0xee   : > { %v1024_v2 = vpop.f32.mrf.mxu0  ;;  %4025 = vmatmul.mubr.bf16.gmra.mxu1 %v1617_v60  ;;  %v4654_v45 = vpop.f32.mrf.mxu1 }
  0xef   : > { %v1025_v4 = vadd.f32 %v4597_v13, %v1024_v2  ;;  %v1499_v5 = vmax.f32 %v1033_v0, 0.0 }
  0xf0   : > { %v3890_v6 = vpop.f32.mrf.mxu0  ;;  %v4656_v51 = vpop.f32.mrf.mxu1 }
  0xf1   : > { %v1497_v9 = vmax.f32 %v1025_v4, 0.0  ;;  %v1619_v15 = vpack.c.bf16 %v1499_v5, %v1498_v10  ;;  %v1046_v20 = vadd.f32 %v3890_v6, %v4597_v13 }
  0xf2   : > { %v1037_v11 = vpop.f32.mrf.mxu0  ;;  %v4658_v56 = vpop.f32.mrf.mxu1 }
  0xf3   : > { %v1618_v14 = vpack.c.bf16 %v1497_v9, %v1496_v8  ;;  %v1038_v18 = vadd.f32 %v4597_v13, %v1037_v11  ;;  %v1502_v29 = vmax.f32 %v1046_v20, 0.0 }
  0xf4   : > { %v3891_v16 = vpop.f32.mrf.mxu0  ;;  %v4663_v63 = vpop.f32.mrf.mxu1 }
  0xf5   : > { %v1049_v19 = vadd.f32 %v3891_v16, %v4597_v13  ;;  %4028 = vmatprep.mubr.bf16.mxu1 %v1618_v14  ;;  %v1500_v27 = vmax.f32 %v1038_v18, 0.0 }
  0xf6   : > { %v1040_v21 = vpop.f32.mrf.mxu0  ;;  %4029 = vmatmul.mubr.bf16.gmra.mxu1 %v1619_v15  ;;  %v4669_v5 = vpop.f32.mrf.mxu1 }
  0xf7   : > { %v1041_v23 = vadd.f32 %v4597_v13, %v1040_v21  ;;  %v1503_v24 = vmax.f32 %v1049_v19, 0.0 }
  0xf8   : > { %v3894_v25 = vpop.f32.mrf.mxu0  ;;  %v4671_v11 = vpop.f32.mrf.mxu1 }
  0xf9   : > { %v1501_v28 = vmax.f32 %v1041_v23, 0.0  ;;  %v1621_v33 = vpack.c.bf16 %v1503_v24, %v1502_v29  ;;  %v1062_v38 = vadd.f32 %v3894_v25, %v4597_v13 }
  0xfa   : > { %v1053_v30 = vpop.f32.mrf.mxu0  ;;  %v4673_v18 = vpop.f32.mrf.mxu1 }
  0xfb   : > { %v1620_v32 = vpack.c.bf16 %v1501_v28, %v1500_v27  ;;  %v1054_v36 = vadd.f32 %v4597_v13, %v1053_v30  ;;  %v1506_v49 = vmax.f32 %v1062_v38, 0.0 }
  0xfc   : > { %v3895_v34 = vpop.f32.mrf.mxu0  ;;  %v4678_v24 = vpop.f32.mrf.mxu1 }
  0xfd   : > { %v1065_v37 = vadd.f32 %v3895_v34, %v4597_v13  ;;  %4032 = vmatprep.mubr.bf16.mxu1 %v1620_v32  ;;  %v1504_v46 = vmax.f32 %v1054_v36, 0.0 }
  0xfe   : > { %v1056_v39 = vpop.f32.mrf.mxu0  ;;  %4033 = vmatmul.mubr.bf16.gmra.mxu1 %v1621_v33  ;;  %v4681_v29 = vpop.f32.mrf.mxu1 }
  0xff   : > { %v1057_v41 = vadd.f32 %v4597_v13, %v1056_v39  ;;  %v1507_v42 = vmax.f32 %v1065_v37, 0.0 }
 0x100   : > { %v3898_v44 = vpop.f32.mrf.mxu0  ;;  %v4683_v36 = vpop.f32.mrf.mxu1 }
 0x101   : > { %v1505_v47 = vmax.f32 %v1057_v41, 0.0  ;;  %v1623_v54 = vpack.c.bf16 %v1507_v42, %v1506_v49  ;;  %v1078_v60 = vadd.f32 %v3898_v44, %v4597_v13 }
 0x102   : > { %v1069_v50 = vpop.f32.mrf.mxu0  ;;  %v4685_v41 = vpop.f32.mrf.mxu1 }
 0x103   : > { %v1622_v52 = vpack.c.bf16 %v1505_v47, %v1504_v46  ;;  %v1070_v57 = vadd.f32 %v4597_v13, %v1069_v50  ;;  %v1510_v9 = vmax.f32 %v1078_v60, 0.0 }
 0x104   : > { %v3899_v55 = vpop.f32.mrf.mxu0  ;;  %v4690_v49 = vpop.f32.mrf.mxu1 }
 0x105   : > { %v1081_v59 = vadd.f32 %v3899_v55, %v4597_v13  ;;  %4036 = vmatprep.mubr.bf16.mxu1 %v1622_v52  ;;  %v1508_v6 = vmax.f32 %v1070_v57, 0.0 }
 0x106   : > { %v1072_v61 = vpop.f32.mrf.mxu0  ;;  %4037 = vmatmul.mubr.bf16.gmra.mxu1 %v1623_v54  ;;  %v4693_v55 = vpop.f32.mrf.mxu1 }
 0x107   : > { %v1073_v0 = vadd.f32 %v4597_v13, %v1072_v61  ;;  %v1511_v2 = vmax.f32 %v1081_v59, 0.0 }
 0x108   : > { %v3902_v4 = vpop.f32.mrf.mxu0 }
 0x109   : > { %v1509_v8 = vmax.f32 %v1073_v0, 0.0  ;;  %v1625_v15 = vpack.c.bf16 %v1511_v2, %v1510_v9  ;;  %v1094_v21 = vadd.f32 %v3902_v4, %v4597_v13  ;;  %v4695_v0 = vpop.f32.mrf.mxu1 }
 0x10a   : > { %v1085_v10 = vpop.f32.mrf.mxu0 }
 0x10b   : > { %v1624_v14 = vpack.c.bf16 %v1509_v8, %v1508_v6  ;;  %v1086_v19 = vadd.f32 %v4597_v13, %v1085_v10  ;;  %v1514_v33 = vmax.f32 %v1094_v21, 0.0  ;;  %v4697_v6 = vpop.f32.mrf.mxu1 }
 0x10c   : > { %v3903_v16 = vpop.f32.mrf.mxu0 }
 0x10d   : > { %v1097_v20 = vadd.f32 %v3903_v16, %v4597_v13  ;;  %4040 = vmatprep.mubr.bf16.mxu1 %v1624_v14  ;;  %v1512_v30 = vmax.f32 %v1086_v19, 0.0 }
 0x10e   : > { %v1088_v23 = vpop.f32.mrf.mxu0  ;;  %4041 = vmatmul.mubr.bf16.gmra.mxu1 %v1625_v15  ;;  %v4702_v15 = vpop.f32.mrf.mxu1 }
 0x10f   : > { %v1089_v25 = vadd.f32 %v4597_v13, %v1088_v23  ;;  %v1515_v27 = vmax.f32 %v1097_v20, 0.0 }
 0x110   : > { %v3906_v28 = vpop.f32.mrf.mxu0  ;;  %v4705_v21 = vpop.f32.mrf.mxu1 }
 0x111   : > { %v1513_v32 = vmax.f32 %v1089_v25, 0.0  ;;  %v1627_v38 = vpack.c.bf16 %v1515_v27, %v1514_v33  ;;  %v1110_v46 = vadd.f32 %v3906_v28, %v4597_v13 }
 0x112   : > { %v1101_v34 = vpop.f32.mrf.mxu0 }
 0x113   : > { %v1626_v37 = vpack.c.bf16 %v1513_v32, %v1512_v30  ;;  %v1102_v42 = vadd.f32 %v4597_v13, %v1101_v34  ;;  %v1518_v60 = vmax.f32 %v1110_v46, 0.0  ;;  %v4707_v30 = vpop.f32.mrf.mxu1 }
 0x114   : > { %v3907_v39 = vpop.f32.mrf.mxu0 }
 0x115   : > { %v1113_v44 = vadd.f32 %v3907_v39, %v4597_v13  ;;  %4044 = vmatprep.mubr.bf16.mxu1 %v1626_v37  ;;  %v1516_v57 = vmax.f32 %v1102_v42, 0.0  ;;  %v4709_v37 = vpop.f32.mrf.mxu1 }
 0x116   : > { %v1104_v47 = vpop.f32.mrf.mxu0  ;;  %4045 = vmatmul.mubr.bf16.gmra.mxu1 %v1627_v38 }
 0x117   : > { %v1105_v50 = vadd.f32 %v4597_v13, %v1104_v47  ;;  %v1519_v52 = vmax.f32 %v1113_v44, 0.0  ;;  %v4714_v46 = vpop.f32.mrf.mxu1 }
 0x118   : > { %v3910_v54 = vpop.f32.mrf.mxu0 }
 0x119   : > { %v1517_v59 = vmax.f32 %v1105_v50, 0.0  ;;  %v1629_v2 = vpack.c.bf16 %v1519_v52, %v1518_v60  ;;  %v1126_v10 = vadd.f32 %v3910_v54, %v4597_v13  ;;  %v4717_v54 = vpop.f32.mrf.mxu1 }
 0x11a   : > { %v1117_v61 = vpop.f32.mrf.mxu0 }
 0x11b   : > { %v1628_v1 = vpack.c.bf16 %v1517_v59, %v1516_v57  ;;  %v1118_v8 = vadd.f32 %v4597_v13, %v1117_v61  ;;  %v1522_v27 = vmax.f32 %v1126_v10, 0.0 }
 0x11c   : > { %v3911_v4 = vpop.f32.mrf.mxu0 }
 0x11d   : > { %v1129_v9 = vadd.f32 %v3911_v4, %v4597_v13  ;;  %4048 = vmatprep.mubr.bf16.mxu1 %v1628_v1  ;;  %v1520_v23 = vmax.f32 %v1118_v8, 0.0  ;;  %v4719_v8 = vpop.f32.mrf.mxu1 }
 0x11e   : > { %v1120_v14 = vpop.f32.mrf.mxu0  ;;  %4049 = vmatmul.mubr.bf16.gmra.mxu1 %v1629_v2 }
 0x11f   : > { %v1121_v16 = vadd.f32 %v4597_v13, %v1120_v14  ;;  %v1523_v19 = vmax.f32 %v1129_v9, 0.0 }
 0x120   : > { %v3914_v20 = vpop.f32.mrf.mxu0 }
 0x121   : > { %v1521_v25 = vmax.f32 %v1121_v16, 0.0  ;;  %v1631_v33 = vpack.c.bf16 %v1523_v19, %v1522_v27  ;;  %v1142_v42 = vadd.f32 %v3914_v20, %v4597_v13 }
 0x122   : > { %v1133_v28 = vpop.f32.mrf.mxu0 }
 0x123   : > { %v1630_v32 = vpack.c.bf16 %v1521_v25, %v1520_v23  ;;  %v1134_v38 = vadd.f32 %v4597_v13, %v1133_v28  ;;  %v1526_v60 = vmax.f32 %v1142_v42, 0.0  ;;  %v4725_v25 = vpop.f32.mrf.mxu1 }
 0x124   : > { %v3915_v34 = vpop.f32.mrf.mxu0 }
 0x125   : > { %v1145_v39 = vadd.f32 %v3915_v34, %v4597_v13  ;;  %4052 = vmatprep.mubr.bf16.mxu1 %v1630_v32  ;;  %v1524_v57 = vmax.f32 %v1134_v38, 0.0  ;;  %v4727_v42 = vpop.f32.mrf.mxu1 }
 0x126   : > { %v1136_v44 = vpop.f32.mrf.mxu0  ;;  %4053 = vmatmul.mubr.bf16.gmra.mxu1 %v1631_v33 }
 0x127   : > { %v1137_v47 = vadd.f32 %v4597_v13, %v1136_v44  ;;  %v1527_v50 = vmax.f32 %v1145_v39, 0.0 }
 0x128   : > { %v3918_v52 = vpop.f32.mrf.mxu0 }
 0x129   : > { %v1525_v59 = vmax.f32 %v1137_v47, 0.0  ;;  %v1633_v2 = vpack.c.bf16 %v1527_v50, %v1526_v60  ;;  %v1158_v14 = vadd.f32 %v3918_v52, %v4597_v13 }
 0x12a   : > { %v1149_v61 = vpop.f32.mrf.mxu0 }
 0x12b   : > { %v1632_v1 = vpack.c.bf16 %v1525_v59, %v1524_v57  ;;  %v1150_v9 = vadd.f32 %v4597_v13, %v1149_v61  ;;  %v1530_v32 = vmax.f32 %v1158_v14, 0.0  ;;  %v4733_v61 = vpop.f32.mrf.mxu1 }
 0x12c   : > { %v3919_v4 = vpop.f32.mrf.mxu0 }
 0x12d   : > { %v1161_v10 = vadd.f32 %v3919_v4, %v4597_v13  ;;  %4056 = vmatprep.mubr.bf16.mxu1 %v1632_v1  ;;  %v1528_v27 = vmax.f32 %v1150_v9, 0.0 }
 0x12e   : > { %v1152_v16 = vpop.f32.mrf.mxu0  ;;  %4057 = vmatmul.mubr.bf16.gmra.mxu1 %v1633_v2 }
 0x12f   : > { %v1153_v19 = vadd.f32 %v4597_v13, %v1152_v16  ;;  %v1531_v20 = vmax.f32 %v1161_v10, 0.0 }
 0x130   : > { %v3922_v23 = vpop.f32.mrf.mxu0 }
 0x131   : > { %v1529_v28 = vmax.f32 %v1153_v19, 0.0  ;;  %v1635_v38 = vpack.c.bf16 %v1531_v20, %v1530_v32  ;;  %v1174_v50 = vadd.f32 %v3922_v23, %v4597_v13  ;;  %v4735_v19 = vpop.f32.mrf.mxu1 }
 0x132   : > { %v1165_v33 = vpop.f32.mrf.mxu0 }
 0x133   : > { %v1634_v34 = vpack.c.bf16 %v1529_v28, %v1528_v27  ;;  %v1166_v44 = vadd.f32 %v4597_v13, %v1165_v33  ;;  %v1534_v4 = vmax.f32 %v1174_v50, 0.0 }
 0x134   : > { %v3923_v39 = vpop.f32.mrf.mxu0 }
 0x135   : > { %v1177_v47 = vadd.f32 %v3923_v39, %v4597_v13  ;;  %4060 = vmatprep.mubr.bf16.mxu1 %v1634_v34  ;;  %v1532_v1 = vmax.f32 %v1166_v44, 0.0 }
 0x136   : > { %v1168_v52 = vpop.f32.mrf.mxu0  ;;  %4061 = vmatmul.mubr.bf16.gmra.mxu1 %v1635_v38  ;;  %v4741_v38 = vpop.f32.mrf.mxu1 }
 0x137   : > { %v1169_v57 = vadd.f32 %v4597_v13, %v1168_v52  ;;  %v1535_v59 = vmax.f32 %v1177_v47, 0.0 }
 0x138   : > { %v3926_v60 = vpop.f32.mrf.mxu0 }
 0x139   : > { %v1533_v2 = vmax.f32 %v1169_v57, 0.0  ;;  %v1637_v14 = vpack.c.bf16 %v1535_v59, %v1534_v4  ;;  %v1190_v27 = vadd.f32 %v3926_v60, %v4597_v13 }
 0x13a   : > { %v1181_v9 = vpop.f32.mrf.mxu0 }
 0x13b   : > { %v1636_v10 = vpack.c.bf16 %v1533_v2, %v1532_v1  ;;  %v1182_v20 = vadd.f32 %v4597_v13, %v1181_v9  ;;  %v1538_v47 = vmax.f32 %v1190_v27, 0.0  ;;  %v4743_v1 = vpop.f32.mrf.mxu1 }
 0x13c   : > { %v3927_v16 = vpop.f32.mrf.mxu0 }
 0x13d   : > { %v1193_v23 = vadd.f32 %v3927_v16, %v4597_v13  ;;  %4064 = vmatprep.mubr.bf16.mxu1 %v1636_v10  ;;  %v1536_v39 = vmax.f32 %v1182_v20, 0.0  ;;  %v4749_v20 = vpop.f32.mrf.mxu1 }
 0x13e   : > { %v1184_v28 = vpop.f32.mrf.mxu0  ;;  %4065 = vmatmul.mubr.bf16.gmra.mxu1 %v1637_v14 }
 0x13f   : > { %v1185_v32 = vadd.f32 %v4597_v13, %v1184_v28  ;;  %v1539_v33 = vmax.f32 %v1193_v23, 0.0 }
 0x140   : > { %v3930_v34 = vpop.f32.mrf.mxu0 }
 0x141   : > { %v1537_v44 = vmax.f32 %v1185_v32, 0.0  ;;  %v1639_v57 = vpack.c.bf16 %v1539_v33, %v1538_v47  ;;  %v1206_v4 = vadd.f32 %v3930_v34, %v4597_v13  ;;  %v4751_v47 = vpop.f32.mrf.mxu1  ;;  %v1230_v34 = vadd.f32 %v4597_v13, %v4612_v48 }
 0x142   : > { %v1197_v50 = vpop.f32.mrf.mxu0 }
 0x143   : > { %v1638_v52 = vpack.c.bf16 %v1537_v44, %v1536_v39  ;;  %v1198_v2 = vadd.f32 %v4597_v13, %v1197_v50  ;;  %v1542_v28 = vmax.f32 %v1206_v4, 0.0  ;;  %v1233_v50 = vadd.f32 %v4597_v13, %v4620_v58 }
 0x144   : > { %v3931_v59 = vpop.f32.mrf.mxu0 }
 0x145   : > { %v1209_v60 = vadd.f32 %v3931_v59, %v4597_v13  ;;  %4068 = vmatprep.mubr.bf16.mxu1 %v1638_v52  ;;  %v1540_v23 = vmax.f32 %v1198_v2, 0.0 }
 0x146   : > { %v1200_v9 = vpop.f32.mrf.mxu0  ;;  %4069 = vmatmul.mubr.bf16.gmra.mxu1 %v1639_v57 }
 0x147   : > { %v1201_v10 = vadd.f32 %v4597_v13, %v1200_v9  ;;  %v1543_v14 = vmax.f32 %v1209_v60, 0.0  ;;  %v4761_v9 = vpop.f32.mrf.mxu1 }
 0x148   : > { %v3934_v16 = vpop.f32.mrf.mxu0 }
 0x149   : > { %v1541_v27 = vmax.f32 %v1201_v10, 0.0  ;;  %v1641_v39 = vpack.c.bf16 %v1543_v14, %v1542_v28  ;;  %v1222_v59 = vadd.f32 %v3934_v16, %v4597_v13  ;;  %v1548_v10 = vmax.f32 %v1230_v34, 0.0 }
 0x14a   : > { %v1213_v32 = vpop.f32.mrf.mxu0  ;;  %v1549_v14 = vmax.f32 %v1233_v50, 0.0  ;;  %v1238_v28 = vadd.f32 %v4607_v43, %v4597_v13 }
 0x14b   : > { %v1640_v33 = vpack.c.bf16 %v1541_v27, %v1540_v23  ;;  %v1214_v52 = vadd.f32 %v4597_v13, %v1213_v32  ;;  %v1546_v27 = vmax.f32 %v1222_v59, 0.0  ;;  %v1241_v32 = vadd.f32 %v4618_v53, %v4597_v13 }
 0x14c   : > { %v3935_v44 = vpop.f32.mrf.mxu0  ;;  %v1644_v34 = vpack.c.bf16 %v1549_v14, %v1548_v10  ;;  %v1550_v50 = vmax.f32 %v1238_v28, 0.0  ;;  %v1273_v28 = vadd.f32 %v4642_v26, %v4597_v13  ;;  %v1286_v26 = vadd.f32 %v4646_v35, %v4597_v13 }
 0x14d   : > { %v1225_v57 = vadd.f32 %v3935_v44, %v4597_v13  ;;  %4072 = vmatprep.mubr.bf16.mxu1 %v1640_v33  ;;  %v1544_v48 = vmax.f32 %v1214_v52, 0.0  ;;  %v4767_v33 = vpop.f32.mrf.mxu1  ;;  %v1249_v44 = vadd.f32 %v4597_v13, %v4632_v12  ;;  %v1551_v52 = vmax.f32 %v1241_v32, 0.0 }
 0x14e   : > { %v1216_v2 = vpop.f32.mrf.mxu0  ;;  %4073 = vmatmul.mubr.bf16.gmra.mxu1 %v1641_v39  ;;  %v1246_v39 = vadd.f32 %v4597_v13, %v4627_v3  ;;  %v1257_v3 = vadd.f32 %v4630_v7, %v4597_v13  ;;  %v1262_v12 = vadd.f32 %v4597_v13, %v4639_v22  ;;  %v1270_v7 = vadd.f32 %v4634_v17, %v4597_v13 }
 0x14f   : > { %v1217_v60 = vadd.f32 %v4597_v13, %v1216_v2  ;;  %v1547_v4 = vmax.f32 %v1225_v57, 0.0  ;;  %v4773_v57 = vpop.f32.mrf.mxu1  ;;  %v1553_v59 = vmax.f32 %v1249_v44, 0.0  ;;  %v1645_v53 = vpack.c.bf16 %v1551_v52, %v1550_v50 }
 0x150   : > { %v1552_v43 = vmax.f32 %v1246_v39, 0.0  ;;  %v1254_v2 = vadd.f32 %v4622_v62, %v4597_v13  ;;  %v1281_v32 = vadd.f32 %v4597_v13, %v4656_v51  ;;  %v1558_v39 = vmax.f32 %v1270_v7, 0.0 }
 0x151   : > { %v1545_v23 = vmax.f32 %v1217_v60, 0.0  ;;  %v1643_v16 = vpack.c.bf16 %v1547_v4, %v1546_v27  ;;  %v4779_v60 = vpop.f32.mrf.mxu1  ;;  %v1265_v4 = vadd.f32 %v4597_v13, %v4644_v31  ;;  %v1556_v27 = vmax.f32 %v1262_v12, 0.0 }
 0x152   : > { %v1646_v10 = vpack.c.bf16 %v1553_v59, %v1552_v43  ;;  %v1554_v14 = vmax.f32 %v1254_v2, 0.0  ;;  %v1278_v31 = vadd.f32 %v4597_v13, %v4651_v40  ;;  %v1559_v44 = vmax.f32 %v1273_v28, 0.0 }
 0x153   : > { %v1642_v58 = vpack.c.bf16 %v1545_v23, %v1544_v48  ;;  %v1555_v48 = vmax.f32 %v1257_v3, 0.0  ;;  %v4785_v23 = vpop.f32.mrf.mxu1  ;;  %v1557_v62 = vmax.f32 %v1265_v4, 0.0  ;;  %v1561_v17 = vmax.f32 %v1281_v32, 0.0 }
 0x154   : > { %v1560_v50 = vmax.f32 %v1278_v31, 0.0  ;;  %v1649_v52 = vpack.c.bf16 %v1559_v44, %v1558_v39  ;;  %v1289_v43 = vadd.f32 %v4654_v45, %v4597_v13  ;;  %v1294_v51 = vadd.f32 %v4597_v13, %v4663_v63 }
 0x155   : > { %4076 = vmatprep.mubr.bf16.mxu1 %v1642_v58  ;;  %v1647_v58 = vpack.c.bf16 %v1555_v48, %v1554_v14  ;;  %v4791_v22 = vpop.f32.mrf.mxu1  ;;  %v1297_v59 = vadd.f32 %v4597_v13, %v4671_v11  ;;  %v1562_v2 = vmax.f32 %v1286_v26, 0.0  ;;  %v1302_v45 = vadd.f32 %v4658_v56, %v4597_v13 }
 0x156   : > { %4077 = vmatmul.mubr.bf16.gmra.mxu1 %v1643_v16  ;;  %v1648_v16 = vpack.c.bf16 %v1557_v62, %v1556_v27  ;;  %v1563_v3 = vmax.f32 %v1289_v43, 0.0  ;;  %v1564_v4 = vmax.f32 %v1294_v51, 0.0  ;;  %v1305_v14 = vadd.f32 %v4669_v5, %v4597_v13 }
 0x157   : > { %4080 = vmatprep.mubr.bf16.mxu1 %v1644_v34  ;;  %v4797_v34 = vpop.f32.mrf.mxu1  ;;  %v1565_v35 = vmax.f32 %v1297_v59, 0.0  ;;  %v1310_v11 = vadd.f32 %v4597_v13, %v4678_v24  ;;  %v1313_v48 = vadd.f32 %v4597_v13, %v4683_v36  ;;  %v1566_v62 = vmax.f32 %v1302_v45, 0.0 }
 0x158   : > { %v1318_v5 = vadd.f32 %v4673_v18, %v4597_v13  ;;  %v1321_v32 = vadd.f32 %v4681_v29, %v4597_v13  ;;  %v1326_v36 = vadd.f32 %v4597_v13, %v4690_v49  ;;  %v1334_v29 = vadd.f32 %v4685_v41, %v4597_v13 }
 0x159   : > { %v4803_v40 = vpop.f32.mrf.mxu1  ;;  %v1652_v27 = vpack.c.bf16 %v1565_v35, %v1564_v4  ;;  %v1568_v28 = vmax.f32 %v1310_v11, 0.0  ;;  %v1569_v56 = vmax.f32 %v1313_v48, 0.0  ;;  %v1337_v43 = vadd.f32 %v4693_v55, %v4597_v13 }
 0x15a   : > { %v1570_v44 = vmax.f32 %v1318_v5, 0.0  ;;  %v1345_v51 = vadd.f32 %v4597_v13, %v4707_v30  ;;  %v1350_v55 = vadd.f32 %v4697_v6, %v4597_v13  ;;  %v1358_v30 = vadd.f32 %v4597_v13, %v4714_v46 }
 0x15b   : > { %v4809_v12 = vpop.f32.mrf.mxu1  ;;  %v1654_v39 = vpack.c.bf16 %v1569_v56, %v1568_v28  ;;  %v1361_v45 = vadd.f32 %v4597_v13, %v4719_v8  ;;  %v1369_v28 = vadd.f32 %v4717_v54, %v4597_v13  ;;  %v1374_v8 = vadd.f32 %v4597_v13, %v4727_v42 }
 0x15c   : > { %v1577_v41 = vmax.f32 %v1345_v51, 0.0  ;;  %v1578_v11 = vmax.f32 %v1350_v55, 0.0  ;;  %v1377_v56 = vadd.f32 %v4597_v13, %v4735_v19  ;;  %v1382_v54 = vadd.f32 %v4725_v25, %v4597_v13 }
 0x15d   : > { %v4815_v63 = vpop.f32.mrf.mxu1  ;;  %v1581_v6 = vmax.f32 %v1361_v45, 0.0  ;;  %v1390_v19 = vadd.f32 %v4597_v13, %v4743_v1  ;;  %v1409_v55 = vadd.f32 %v4597_v13, %v4779_v60 }
 0x15e   : > { %4081 = vmatmul.mubr.bf16.gmra.mxu1 %v1645_v53  ;;  %v1650_v53 = vpack.c.bf16 %v1561_v17, %v1560_v50  ;;  %v1571_v50 = vmax.f32 %v1321_v32, 0.0  ;;  %v1583_v32 = vmax.f32 %v1369_v28, 0.0 }
 0x15f   : > { %4084 = vmatprep.mubr.bf16.mxu1 %v1646_v10  ;;  %v1651_v10 = vpack.c.bf16 %v1563_v3, %v1562_v2  ;;  %v4821_v7 = vpop.f32.mrf.mxu1  ;;  %v1575_v2 = vmax.f32 %v1337_v43, 0.0 }
 0x160   : > { %v1655_v26 = vpack.c.bf16 %v1571_v50, %v1570_v44  ;;  %v1385_v44 = vadd.f32 %v4733_v61, %v4597_v13  ;;  %v1393_v50 = vadd.f32 %v4597_v13, %v4751_v47  ;;  %v4884_v61 = vld [vmem:[%s5534_s4] ss:$0 sm:$0xff] }
 0x161   : > { %v4827_v24 = vpop.f32.mrf.mxu1 }
 0x162   : > { %v1589_v25 = vmax.f32 %v1393_v50, 0.0 }
 0x163   : > { %v4833_v17 = vpop.f32.mrf.mxu1 }
 0x165   : > { %v4839_v49 = vpop.f32.mrf.mxu1 }
 0x166   : > { %4085 = vmatmul.mubr.bf16.gmra.mxu1 %v1647_v58  ;;  %v1567_v58 = vmax.f32 %v1305_v14, 0.0 }
 0x167   : > { %4088 = vmatprep.mubr.bf16.mxu1 %v1648_v16  ;;  %v1329_v16 = vadd.f32 %v4597_v13, %v4695_v0  ;;  %v1342_v0 = vadd.f32 %v4597_v13, %v4702_v15  ;;  %v4845_v3 = vpop.f32.mrf.mxu1 }
 0x168   : > { %v1653_v31 = vpack.c.bf16 %v1567_v58, %v1566_v62  ;;  %v1580_v62 = vmax.f32 %v1358_v30, 0.0 }
 0x169   : > { %v1573_v18 = vmax.f32 %v1329_v16, 0.0  ;;  %v1576_v4 = vmax.f32 %v1342_v0, 0.0  ;;  %v4851_v15 = vpop.f32.mrf.mxu1  ;;  %v1584_v16 = vmax.f32 %v1374_v8, 0.0  ;;  %v1588_v0 = vmax.f32 %v1390_v19, 0.0 }
 0x16b   : > { %v1658_v14 = vpack.c.bf16 %v1577_v41, %v1576_v4  ;;  %v1664_v30 = vpack.c.bf16 %v1589_v25, %v1588_v0 }
 0x16e   : > { %4089 = vmatmul.mubr.bf16.gmra.mxu1 %v1649_v52  ;;  %v1572_v52 = vmax.f32 %v1326_v36, 0.0 }
 0x16f   : > { %4092 = vmatprep.mubr.bf16.mxu1 %v1650_v53  ;;  %v1574_v53 = vmax.f32 %v1334_v29, 0.0  ;;  %v1587_v29 = vmax.f32 %v1385_v44, 0.0 }
 0x170   : > { %v1656_v59 = vpack.c.bf16 %v1573_v18, %v1572_v52 }
 0x171   : > { %v1657_v35 = vpack.c.bf16 %v1575_v2, %v1574_v53  ;;  %v1398_v53 = vadd.f32 %v4741_v38, %v4597_v13  ;;  %v1401_v2 = vadd.f32 %v4749_v20, %v4597_v13 }
 0x173   : > { %v1591_v20 = vmax.f32 %v1401_v2, 0.0  ;;  %v1433_v2 = vadd.f32 %v4797_v34, %v4597_v13 }
 0x176   : > { %4093 = vmatmul.mubr.bf16.gmra.mxu1 %v1651_v10  ;;  %v1353_v10 = vadd.f32 %v4705_v21, %v4597_v13  ;;  %v1366_v21 = vadd.f32 %v4709_v37, %v4597_v13  ;;  %v1585_v37 = vmax.f32 %v1377_v56, 0.0 }
 0x177   : > { %4096 = vmatprep.mubr.bf16.mxu1 %v1652_v27  ;;  %v4857_v27 = vpop.f32.mrf.mxu1 }
 0x178   : > { %v1579_v48 = vmax.f32 %v1353_v10, 0.0  ;;  %v1582_v5 = vmax.f32 %v1366_v21, 0.0  ;;  %v1662_v52 = vpack.c.bf16 %v1585_v37, %v1584_v16  ;;  %v1593_v21 = vmax.f32 %v1409_v55, 0.0 }
 0x179   : > { %v4863_v46 = vpop.f32.mrf.mxu1 }
 0x17a   : > { %v1659_v58 = vpack.c.bf16 %v1579_v48, %v1578_v11  ;;  %v1590_v48 = vmax.f32 %v1398_v53, 0.0  ;;  %v1430_v53 = vadd.f32 %v4785_v23, %v4597_v13 }
 0x17b   : > { %v4869_v36 = vpop.f32.mrf.mxu1 }
 0x17d   : > { %v4875_v42 = vpop.f32.mrf.mxu1 }
 0x17e   : > { %4097 = vmatmul.mubr.bf16.gmra.mxu1 %v1653_v31  ;;  %v1660_v31 = vpack.c.bf16 %v1581_v6, %v1580_v62 }
 0x17f   : > { %4100 = vmatprep.mubr.bf16.mxu1 %v1654_v39  ;;  %v1661_v39 = vpack.c.bf16 %v1583_v32, %v1582_v5  ;;  %v1414_v5 = vadd.f32 %v4761_v9, %v4597_v13  ;;  %v1417_v32 = vadd.f32 %v4773_v57, %v4597_v13 }
 0x181   : > { %v1594_v57 = vmax.f32 %v1414_v5, 0.0 }
 0x186   : > { %4101 = vmatmul.mubr.bf16.gmra.mxu1 %v1655_v26  ;;  %v1586_v26 = vmax.f32 %v1382_v54, 0.0  ;;  %v1425_v54 = vadd.f32 %v4597_v13, %v4803_v40 }
 0x187   : > { %4104 = vmatprep.mubr.bf16.mxu1 %v1656_v59 }
 0x188   : > { %v1663_v47 = vpack.c.bf16 %v1587_v29, %v1586_v26  ;;  %v1595_v26 = vmax.f32 %v1417_v32, 0.0  ;;  %v1597_v25 = vmax.f32 %v1425_v54, 0.0 }
 0x18e   : > { %4105 = vmatmul.mubr.bf16.gmra.mxu1 %v1657_v35  ;;  %v1406_v35 = vadd.f32 %v4597_v13, %v4767_v33 }
 0x18f   : > { %4108 = vmatprep.mubr.bf16.mxu1 %v1658_v14 }
 0x196   : > { %4109 = vmatmul.mubr.bf16.gmra.mxu1 %v1659_v58  ;;  %v1592_v58 = vmax.f32 %v1406_v35, 0.0  ;;  %v4924_v35 = vld [vmem:[%s5532_s2] ss:$0 sm:$0xff] }
 0x197   : > { %4112 = vmatprep.mubr.bf16.mxu1 %v1660_v31  ;;  %v1665_v31 = vpack.c.bf16 %v1591_v20, %v1590_v48  ;;  %v1438_v55 = vadd.f32 %v4924_v35, %v4815_v63  ;;  %v1454_v5 = vadd.f32 %v4924_v35, %v4839_v49  ;;  %v1457_v32 = vadd.f32 %v4924_v35, %v4851_v15 }
 0x198   : > { %v1666_v19 = vpack.c.bf16 %v1593_v21, %v1592_v58 }
 0x19e   : > { %v4018_v18 = vpop.f32.mrf.mxu1  ;;  %4113 = vmatmul.mubr.bf16.gmra.mxu1 %v1661_v39  ;;  %v1422_v39 = vadd.f32 %v4597_v13, %v4791_v22 }
 0x19f   : > { %4116 = vmatprep.mubr.bf16.mxu1 %v1662_v52  ;;  %v1790_v4 = vadd.f32 %v4018_v18, %v4884_v61 }
 0x1a0   : > { %v1781_v43 = vpop.f32.mrf.mxu1  ;;  %v1596_v0 = vmax.f32 %v1422_v39, 0.0 }
 0x1a1   : > { %v1782_v1 = vadd.f32 %v4884_v61, %v1781_v43  ;;  %v2294_v62 = vmax.f32 %v1790_v4, 0.0 }
 0x1a2   : > { %v4019_v51 = vpop.f32.mrf.mxu1 }
 0x1a3   : > { %v1793_v59 = vadd.f32 %v4019_v51, %v4884_v61  ;;  %v2292_v11 = vmax.f32 %v1782_v1, 0.0 }
 0x1a4   : > { %v1784_v41 = vpop.f32.mrf.mxu1 }
 0x1a5   : > { %v1785_v10 = vadd.f32 %v4884_v61, %v1784_v41  ;;  %v2295_v45 = vmax.f32 %v1793_v59, 0.0 }
 0x1a6   : > { %v4022_v14 = vpop.f32.mrf.mxu1  ;;  %4117 = vmatmul.mubr.bf16.gmra.mxu1 %v1663_v47  ;;  %v1667_v47 = vpack.c.bf16 %v1595_v26, %v1594_v57 }
 0x1a7   : > { %v2293_v38 = vmax.f32 %v1785_v10, 0.0  ;;  %4120 = vmatprep.mubr.bf16.mxu1 %v1664_v30  ;;  %v2421_v28 = vpack.c.bf16 %v2295_v45, %v2294_v62  ;;  %v1806_v16 = vadd.f32 %v4022_v14, %v4884_v61  ;;  %v1441_v10 = vadd.f32 %v4924_v35, %v4827_v24 }
 0x1a8   : > { %v1797_v6 = vpop.f32.mrf.mxu1  ;;  %v1668_v30 = vpack.c.bf16 %v1597_v25, %v1596_v0  ;;  %v1600_v62 = vmax.f32 %v1438_v55, 0.0  ;;  %v1462_v0 = vadd.f32 %v4924_v35, %v4833_v17  ;;  %v1465_v25 = vadd.f32 %v4924_v35, %v4845_v3 }
 0x1a9   : > { %v2420_v33 = vpack.c.bf16 %v2293_v38, %v2292_v11  ;;  %v1798_v60 = vadd.f32 %v4884_v61, %v1797_v6  ;;  %v2298_v29 = vmax.f32 %v1806_v16, 0.0  ;;  %v1598_v11 = vmax.f32 %v1430_v53, 0.0 }
 0x1aa   : > { %v4023_v8 = vpop.f32.mrf.mxu1  ;;  %v1599_v38 = vmax.f32 %v1433_v2, 0.0  ;;  %v1601_v6 = vmax.f32 %v1441_v10, 0.0  ;;  %v1606_v3 = vmax.f32 %v1462_v0, 0.0 }
 0x1ab   : > { %v1809_v56 = vadd.f32 %v4023_v8, %v4884_v61  ;;  %4152 = vmatprep.mubr.msk.bf16.mxu0 %vm2523_vm1, %v2420_v33  ;;  %v2296_v9 = vmax.f32 %v1798_v60, 0.0  ;;  %v1446_v8 = vadd.f32 %v4924_v35, %v4809_v12  ;;  %v1449_v60 = vadd.f32 %v4924_v35, %v4821_v7 }
 0x1ac   : > { %v1800_v37 = vpop.f32.mrf.mxu1  ;;  %4153 = vmatmul.mubr.msk.bf16.vlgmr.msra.gmra.mxu0 %vm2523_vm1, %v2421_v28  ;;  %v1669_v28 = vpack.c.bf16 %v1599_v38, %v1598_v11  ;;  %v1478_v11 = vadd.f32 %v4924_v35, %v4857_v27  ;;  %v1481_v38 = vadd.f32 %v4924_v35, %v4869_v36 }
 0x1ad   : > { %v1801_v44 = vadd.f32 %v4884_v61, %v1800_v37  ;;  %v2299_v50 = vmax.f32 %v1809_v56, 0.0  ;;  %v1670_v37 = vpack.c.bf16 %v1601_v6, %v1600_v62  ;;  %v1602_v7 = vmax.f32 %v1446_v8, 0.0 }
 0x1ae   : > { %v4026_v52 = vpop.f32.mrf.mxu1  ;;  %4121 = vmatmul.mubr.bf16.gmra.mxu1 %v1665_v31 }
 0x1af   : > { %v2297_v18 = vmax.f32 %v1801_v44, 0.0  ;;  %4124 = vmatprep.mubr.bf16.mxu1 %v1666_v19  ;;  %v2423_v22 = vpack.c.bf16 %v2299_v50, %v2298_v29  ;;  %v1822_v4 = vadd.f32 %v4026_v52, %v4884_v61  ;;  %v1603_v19 = vmax.f32 %v1449_v60, 0.0 }
 0x1b0   : > { %v1813_v43 = vpop.f32.mrf.mxu1 }
 0x1b1   : > { %v2422_v51 = vpack.c.bf16 %v2297_v18, %v2296_v9  ;;  %v1814_v40 = vadd.f32 %v4884_v61, %v1813_v43  ;;  %v2302_v48 = vmax.f32 %v1822_v4, 0.0  ;;  %v1604_v9 = vmax.f32 %v1454_v5, 0.0 }
 0x1b2   : > { %v4027_v1 = vpop.f32.mrf.mxu1  ;;  %v1605_v18 = vmax.f32 %v1457_v32, 0.0  ;;  %v1671_v43 = vpack.c.bf16 %v1603_v19, %v1602_v7 }
 0x1b3   : > { %v1825_v59 = vadd.f32 %v4027_v1, %v4884_v61  ;;  %4156 = vmatprep.mubr.msk.bf16.mxu0 %vm2523_vm1, %v2422_v51  ;;  %v2300_v45 = vmax.f32 %v1814_v40, 0.0  ;;  %v1470_v1 = vadd.f32 %v4924_v35, %v4863_v46  ;;  %v1473_v40 = vadd.f32 %v4924_v35, %v4875_v42 }
 0x1b4   : > { %v1816_v41 = vpop.f32.mrf.mxu1  ;;  %4157 = vmatmul.mubr.msk.bf16.gmra.mxu0 %vm2523_vm1, %v2423_v22 }
 0x1b5   : > { %v1817_v23 = vadd.f32 %v4884_v61, %v1816_v41  ;;  %v2303_v13 = vmax.f32 %v1825_v59, 0.0  ;;  %v1607_v41 = vmax.f32 %v1465_v25, 0.0 }
 0x1b6   : > { %v4030_v34 = vpop.f32.mrf.mxu1  ;;  %4125 = vmatmul.mubr.bf16.gmra.mxu1 %v1667_v47  ;;  %v1672_v47 = vpack.c.bf16 %v1605_v18, %v1604_v9 }
 0x1b7   : > { %v2301_v14 = vmax.f32 %v1817_v23, 0.0  ;;  %4128 = vmatprep.mubr.bf16.mxu1 %v1668_v30  ;;  %v2425_v63 = vpack.c.bf16 %v2303_v13, %v2302_v48  ;;  %v1838_v56 = vadd.f32 %v4030_v34, %v4884_v61  ;;  %v1608_v23 = vmax.f32 %v1470_v1, 0.0 }
 0x1b8   : > { %v1829_v20 = vpop.f32.mrf.mxu1  ;;  %v1609_v30 = vmax.f32 %v1473_v40, 0.0 }
 0x1b9   : > { %v2424_v58 = vpack.c.bf16 %v2301_v14, %v2300_v45  ;;  %v1830_v24 = vadd.f32 %v4884_v61, %v1829_v20  ;;  %v2306_v50 = vmax.f32 %v1838_v56, 0.0  ;;  %v1673_v14 = vpack.c.bf16 %v1607_v41, %v1606_v3 }
 0x1ba   : > { %v4031_v21 = vpop.f32.mrf.mxu1  ;;  %v1674_v6 = vpack.c.bf16 %v1609_v30, %v1608_v23 }
 0x1bb   : > { %v1841_v33 = vadd.f32 %v4031_v21, %v4884_v61  ;;  %4160 = vmatprep.mubr.msk.bf16.mxu0 %vm2523_vm1, %v2424_v58  ;;  %v2304_v12 = vmax.f32 %v1830_v24, 0.0 }
 0x1bc   : > { %v1832_v31 = vpop.f32.mrf.mxu1  ;;  %4161 = vmatmul.mubr.msk.bf16.gmra.mxu0 %vm2523_vm1, %v2425_v63 }
 0x1bd   : > { %v1833_v16 = vadd.f32 %v4884_v61, %v1832_v31  ;;  %v2307_v39 = vmax.f32 %v1841_v33, 0.0  ;;  %v1610_v33 = vmax.f32 %v1478_v11, 0.0 }
 0x1be   : > { %v4034_v54 = vpop.f32.mrf.mxu1  ;;  %4129 = vmatmul.mubr.bf16.gmra.mxu1 %v1669_v28  ;;  %v1611_v28 = vmax.f32 %v1481_v38, 0.0 }
 0x1bf   : > { %v2305_v44 = vmax.f32 %v1833_v16, 0.0  ;;  %4132 = vmatprep.mubr.bf16.mxu1 %v1670_v37  ;;  %v2427_v49 = vpack.c.bf16 %v2307_v39, %v2306_v50  ;;  %v1854_v51 = vadd.f32 %v4034_v54, %v4884_v61 }
 0x1c0   : > { %v1845_v52 = vpop.f32.mrf.mxu1  ;;  %v1675_v5 = vpack.c.bf16 %v1611_v28, %v1610_v33 }
 0x1c1   : > { %v2426_v57 = vpack.c.bf16 %v2305_v44, %v2304_v12  ;;  %v1846_v15 = vadd.f32 %v4884_v61, %v1845_v52  ;;  %v2310_v55 = vmax.f32 %v1854_v51, 0.0 }
 0x1c2   : > { %v4035_v26 = vpop.f32.mrf.mxu1 }
 0x1c3   : > { %v1857_v29 = vadd.f32 %v4035_v26, %v4884_v61  ;;  %4164 = vmatprep.mubr.msk.bf16.mxu0 %vm2523_vm1, %v2426_v57  ;;  %v2308_v17 = vmax.f32 %v1846_v15, 0.0 }
 0x1c4   : > { %v1848_v22 = vpop.f32.mrf.mxu1  ;;  %4165 = vmatmul.mubr.msk.bf16.gmra.mxu0 %vm2523_vm1, %v2427_v49 }
 0x1c5   : > { %v1849_v59 = vadd.f32 %v4884_v61, %v1848_v22  ;;  %v2311_v53 = vmax.f32 %v1857_v29, 0.0 }
 0x1c6   : > { %v4038_v2 = vpop.f32.mrf.mxu1  ;;  %4133 = vmatmul.mubr.bf16.gmra.mxu1 %v1671_v43 }
 0x1c7   : > { %v2309_v4 = vmax.f32 %v1849_v59, 0.0  ;;  %4136 = vmatprep.mubr.bf16.mxu1 %v1672_v47  ;;  %v2429_v46 = vpack.c.bf16 %v2311_v53, %v2310_v55  ;;  %v1870_v48 = vadd.f32 %v4038_v2, %v4884_v61 }
 0x1c8   : > { %v1861_v10 = vpop.f32.mrf.mxu1 }
 0x1c9   : > { %v2428_v13 = vpack.c.bf16 %v2309_v4, %v2308_v17  ;;  %v1862_v42 = vadd.f32 %v4884_v61, %v1861_v10  ;;  %v2314_v27 = vmax.f32 %v1870_v48, 0.0 }
 0x1ca   : > { %v4039_v34 = vpop.f32.mrf.mxu1 }
 0x1cb   : > { %v1873_v45 = vadd.f32 %v4039_v34, %v4884_v61  ;;  %4168 = vmatprep.mubr.msk.bf16.mxu0 %vm2523_vm1, %v2428_v13  ;;  %v2312_v21 = vmax.f32 %v1862_v42, 0.0 }
 0x1cc   : > { %v1864_v20 = vpop.f32.mrf.mxu1  ;;  %4169 = vmatmul.mubr.msk.bf16.gmra.mxu0 %vm2523_vm1, %v2429_v46 }
 0x1cd   : > { %v1865_v62 = vadd.f32 %v4884_v61, %v1864_v20  ;;  %v2315_v58 = vmax.f32 %v1873_v45, 0.0 }
 0x1ce   : > { %v4042_v63 = vpop.f32.mrf.mxu1  ;;  %4137 = vmatmul.mubr.bf16.gmra.mxu1 %v1673_v14 }
 0x1cf   : > { %v2313_v24 = vmax.f32 %v1865_v62, 0.0  ;;  %4140 = vmatprep.mubr.bf16.mxu1 %v1674_v6  ;;  %v2431_v36 = vpack.c.bf16 %v2315_v58, %v2314_v27  ;;  %v1886_v32 = vadd.f32 %v4042_v63, %v4884_v61 }
 0x1d0   : > { %v1877_v8 = vpop.f32.mrf.mxu1 }
 0x1d1   : > { %v2430_v60 = vpack.c.bf16 %v2313_v24, %v2312_v21  ;;  %v1878_v56 = vadd.f32 %v4884_v61, %v1877_v8  ;;  %v2318_v7 = vmax.f32 %v1886_v32, 0.0 }
 0x1d2   : > { %v4043_v35 = vpop.f32.mrf.mxu1 }
 0x1d3   : > { %v1889_v31 = vadd.f32 %v4043_v35, %v4884_v61  ;;  %4172 = vmatprep.mubr.msk.bf16.mxu0 %vm2523_vm1, %v2430_v60  ;;  %v2316_v12 = vmax.f32 %v1878_v56, 0.0 }
 0x1d4   : > { %v1880_v16 = vpop.f32.mrf.mxu1  ;;  %4173 = vmatmul.mubr.msk.bf16.gmra.mxu0 %vm2523_vm1, %v2431_v36 }
 0x1d5   : > { %v1881_v37 = vadd.f32 %v4884_v61, %v1880_v16  ;;  %v2319_v39 = vmax.f32 %v1889_v31, 0.0 }
 0x1d6   : > { %v4046_v54 = vpop.f32.mrf.mxu1  ;;  %4141 = vmatmul.mubr.bf16.gmra.mxu1 %v1675_v5 }
 0x1d7   : > { %v2317_v44 = vmax.f32 %v1881_v37, 0.0  ;;  %v2433_v52 = vpack.c.bf16 %v2319_v39, %v2318_v7  ;;  %v1902_v49 = vadd.f32 %v4046_v54, %v4884_v61 }
 0x1d8   : > { %v1893_v19 = vpop.f32.mrf.mxu1 }
 0x1d9   : > { %v2432_v50 = vpack.c.bf16 %v2317_v44, %v2316_v12  ;;  %v1894_v18 = vadd.f32 %v4884_v61, %v1893_v19  ;;  %v2322_v51 = vmax.f32 %v1902_v49, 0.0 }
 0x1da   : > { %v4047_v9 = vpop.f32.mrf.mxu1 }
 0x1db   : > { %v1905_v57 = vadd.f32 %v4047_v9, %v4884_v61  ;;  %4176 = vmatprep.mubr.msk.bf16.mxu0 %vm2523_vm1, %v2432_v50  ;;  %v2320_v0 = vmax.f32 %v1894_v18, 0.0 }
 0x1dc   : > { %v1896_v26 = vpop.f32.mrf.mxu1  ;;  %4177 = vmatmul.mubr.msk.bf16.gmra.mxu0 %vm2523_vm1, %v2433_v52 }
 0x1dd   : > { %v1897_v15 = vadd.f32 %v4884_v61, %v1896_v26  ;;  %v2323_v29 = vmax.f32 %v1905_v57, 0.0 }
 0x1de   : > { %v4050_v43 = vpop.f32.mrf.mxu1 }
 0x1df   : > { %v2321_v25 = vmax.f32 %v1897_v15, 0.0  ;;  %v2435_v40 = vpack.c.bf16 %v2323_v29, %v2322_v51  ;;  %v1918_v2 = vadd.f32 %v4050_v43, %v4884_v61 }
 0x1e0   : > { %v1909_v22 = vpop.f32.mrf.mxu1 }
 0x1e1   : > { %v2434_v1 = vpack.c.bf16 %v2321_v25, %v2320_v0  ;;  %v1910_v47 = vadd.f32 %v4884_v61, %v1909_v22  ;;  %v2326_v23 = vmax.f32 %v1918_v2, 0.0 }
 0x1e2   : > { %v4051_v59 = vpop.f32.mrf.mxu1 }
 0x1e3   : > { %v1921_v53 = vadd.f32 %v4051_v59, %v4884_v61  ;;  %4180 = vmatprep.mubr.msk.bf16.mxu0 %vm2523_vm1, %v2434_v1  ;;  %v2324_v55 = vmax.f32 %v1910_v47, 0.0 }
 0x1e4   : > { %v1912_v17 = vpop.f32.mrf.mxu1  ;;  %4181 = vmatmul.mubr.msk.bf16.gmra.mxu0 %vm2523_vm1, %v2435_v40 }
 0x1e5   : > { %v1913_v4 = vadd.f32 %v4884_v61, %v1912_v17  ;;  %v2327_v3 = vmax.f32 %v1921_v53, 0.0 }
 0x1e6   : > { %v4054_v41 = vpop.f32.mrf.mxu1 }
 0x1e7   : > { %v2325_v10 = vmax.f32 %v1913_v4, 0.0  ;;  %v2437_v46 = vpack.c.bf16 %v2327_v3, %v2326_v23  ;;  %v1934_v14 = vadd.f32 %v4054_v41, %v4884_v61 }
 0x1e8   : > { %v1925_v30 = vpop.f32.mrf.mxu1 }
 0x1e9   : > { %v2436_v13 = vpack.c.bf16 %v2325_v10, %v2324_v55  ;;  %v1926_v42 = vadd.f32 %v4884_v61, %v1925_v30  ;;  %v2330_v58 = vmax.f32 %v1934_v14, 0.0 }
 0x1ea   : > { %v4055_v34 = vpop.f32.mrf.mxu1 }
 0x1eb   : > { %v1937_v45 = vadd.f32 %v4055_v34, %v4884_v61  ;;  %4184 = vmatprep.mubr.msk.bf16.mxu0 %vm2523_vm1, %v2436_v13  ;;  %v2328_v62 = vmax.f32 %v1926_v42, 0.0 }
 0x1ec   : > { %v1928_v11 = vpop.f32.mrf.mxu1  ;;  %4185 = vmatmul.mubr.msk.bf16.gmra.mxu0 %vm2523_vm1, %v2437_v46 }
 0x1ed   : > { %v1929_v38 = vadd.f32 %v4884_v61, %v1928_v11  ;;  %v2331_v48 = vmax.f32 %v1937_v45, 0.0 }
 0x1ee   : > { %v4058_v20 = vpop.f32.mrf.mxu1 }
 0x1ef   : > { %v2329_v6 = vmax.f32 %v1929_v38, 0.0  ;;  %v2439_v24 = vpack.c.bf16 %v2331_v48, %v2330_v58  ;;  %v1950_v8 = vadd.f32 %v4058_v20, %v4884_v61 }
 0x1f0   : > { %v1941_v63 = vpop.f32.mrf.mxu1 }
 0x1f1   : > { %v2438_v21 = vpack.c.bf16 %v2329_v6, %v2328_v62  ;;  %v1942_v28 = vadd.f32 %v4884_v61, %v1941_v63  ;;  %v2334_v32 = vmax.f32 %v1950_v8, 0.0 }
 0x1f2   : > { %v4059_v33 = vpop.f32.mrf.mxu1 }
 0x1f3   : > { %v1953_v27 = vadd.f32 %v4059_v33, %v4884_v61  ;;  %4188 = vmatprep.mubr.msk.bf16.mxu0 %vm2523_vm1, %v2438_v21  ;;  %v2332_v31 = vmax.f32 %v1942_v28, 0.0 }
 0x1f4   : > { %v1944_v60 = vpop.f32.mrf.mxu1  ;;  %4189 = vmatmul.mubr.msk.bf16.gmra.mxu0 %vm2523_vm1, %v2439_v24 }
 0x1f5   : > { %v1945_v36 = vadd.f32 %v4884_v61, %v1944_v60  ;;  %v2335_v35 = vmax.f32 %v1953_v27, 0.0 }
 0x1f6   : > { %v4062_v56 = vpop.f32.mrf.mxu1 }
 0x1f7   : > { %v2333_v5 = vmax.f32 %v1945_v36, 0.0  ;;  %v2441_v39 = vpack.c.bf16 %v2335_v35, %v2334_v32  ;;  %v1966_v7 = vadd.f32 %v4062_v56, %v4884_v61 }
 0x1f8   : > { %v1957_v16 = vpop.f32.mrf.mxu1 }
 0x1f9   : > { %v2440_v37 = vpack.c.bf16 %v2333_v5, %v2332_v31  ;;  %v1958_v12 = vadd.f32 %v4884_v61, %v1957_v16  ;;  %v2338_v49 = vmax.f32 %v1966_v7, 0.0 }
 0x1fa   : > { %v4063_v54 = vpop.f32.mrf.mxu1 }
 0x1fb   : > { %v1969_v44 = vadd.f32 %v4063_v54, %v4884_v61  ;;  %4192 = vmatprep.mubr.msk.bf16.mxu0 %vm2523_vm1, %v2440_v37  ;;  %v2336_v18 = vmax.f32 %v1958_v12, 0.0 }
 0x1fc   : > { %v1960_v19 = vpop.f32.mrf.mxu1  ;;  %4193 = vmatmul.mubr.msk.bf16.gmra.mxu0 %vm2523_vm1, %v2441_v39 }
 0x1fd   : > { %v1961_v50 = vadd.f32 %v4884_v61, %v1960_v19  ;;  %v2339_v52 = vmax.f32 %v1969_v44, 0.0 }
 0x1fe   : > { %v4066_v9 = vpop.f32.mrf.mxu1 }
 0x1ff   : > { %v2337_v57 = vmax.f32 %v1961_v50, 0.0  ;;  %v2443_v29 = vpack.c.bf16 %v2339_v52, %v2338_v49  ;;  %v1982_v51 = vadd.f32 %v4066_v9, %v4884_v61 }
 0x200   : > { %v1973_v26 = vpop.f32.mrf.mxu1 }
 0x201   : > { %v2442_v15 = vpack.c.bf16 %v2337_v57, %v2336_v18  ;;  %v1974_v0 = vadd.f32 %v4884_v61, %v1973_v26  ;;  %v2342_v2 = vmax.f32 %v1982_v51, 0.0 }
 0x202   : > { %v4067_v43 = vpop.f32.mrf.mxu1 }
 0x203   : > { %v1985_v25 = vadd.f32 %v4067_v43, %v4884_v61  ;;  %4196 = vmatprep.mubr.msk.bf16.mxu0 %vm2523_vm1, %v2442_v15  ;;  %v2340_v47 = vmax.f32 %v1974_v0, 0.0 }
 0x204   : > { %v1976_v22 = vpop.f32.mrf.mxu1  ;;  %4197 = vmatmul.mubr.msk.bf16.gmra.mxu0 %vm2523_vm1, %v2443_v29 }
 0x205   : > { %v1977_v1 = vadd.f32 %v4884_v61, %v1976_v22  ;;  %v2343_v40 = vmax.f32 %v1985_v25, 0.0 }
 0x206   : > { %v4070_v59 = vpop.f32.mrf.mxu1 }
 0x207   : > { %v2341_v53 = vmax.f32 %v1977_v1, 0.0  ;;  %v2445_v3 = vpack.c.bf16 %v2343_v40, %v2342_v2  ;;  %v1998_v23 = vadd.f32 %v4070_v59, %v4884_v61 }
 0x208   : > { %v1989_v17 = vpop.f32.mrf.mxu1 }
 0x209   : > { %v2444_v4 = vpack.c.bf16 %v2341_v53, %v2340_v47  ;;  %v1990_v55 = vadd.f32 %v4884_v61, %v1989_v17  ;;  %v2346_v14 = vmax.f32 %v1998_v23, 0.0 }
 0x20a   : > { %v4071_v41 = vpop.f32.mrf.mxu1 }
 0x20b   : > { %v2001_v10 = vadd.f32 %v4071_v41, %v4884_v61  ;;  %4200 = vmatprep.mubr.msk.bf16.mxu0 %vm2523_vm1, %v2444_v4  ;;  %v2344_v42 = vmax.f32 %v1990_v55, 0.0 }
 0x20c   : > { %v1992_v30 = vpop.f32.mrf.mxu1  ;;  %4201 = vmatmul.mubr.msk.bf16.gmra.mxu0 %vm2523_vm1, %v2445_v3 }
 0x20d   : > { %v1993_v13 = vadd.f32 %v4884_v61, %v1992_v30  ;;  %v2347_v46 = vmax.f32 %v2001_v10, 0.0 }
 0x20e   : > { %v4074_v34 = vpop.f32.mrf.mxu1 }
 0x20f   : > { %v2345_v45 = vmax.f32 %v1993_v13, 0.0  ;;  %v2447_v48 = vpack.c.bf16 %v2347_v46, %v2346_v14  ;;  %v2014_v58 = vadd.f32 %v4074_v34, %v4884_v61 }
 0x210   : > { %v2005_v11 = vpop.f32.mrf.mxu1 }
 0x211   : > { %v2446_v38 = vpack.c.bf16 %v2345_v45, %v2344_v42  ;;  %v2006_v62 = vadd.f32 %v4884_v61, %v2005_v11  ;;  %v2350_v8 = vmax.f32 %v2014_v58, 0.0 }
 0x212   : > { %v4075_v20 = vpop.f32.mrf.mxu1 }
 0x213   : > { %v2017_v6 = vadd.f32 %v4075_v20, %v4884_v61  ;;  %4204 = vmatprep.mubr.msk.bf16.mxu0 %vm2523_vm1, %v2446_v38  ;;  %v2348_v28 = vmax.f32 %v2006_v62, 0.0 }
 0x214   : > { %v2008_v63 = vpop.f32.mrf.mxu1  ;;  %4205 = vmatmul.mubr.msk.bf16.gmra.mxu0 %vm2523_vm1, %v2447_v48 }
 0x215   : > { %v2009_v21 = vadd.f32 %v4884_v61, %v2008_v63  ;;  %v2351_v24 = vmax.f32 %v2017_v6, 0.0 }
 0x216   : > { %v4078_v33 = vpop.f32.mrf.mxu1 }
 0x217   : > { %v2349_v27 = vmax.f32 %v2009_v21, 0.0  ;;  %v2449_v35 = vpack.c.bf16 %v2351_v24, %v2350_v8  ;;  %v2030_v32 = vadd.f32 %v4078_v33, %v4884_v61 }
 0x218   : > { %v2021_v60 = vpop.f32.mrf.mxu1 }
 0x219   : > { %v2448_v36 = vpack.c.bf16 %v2349_v27, %v2348_v28  ;;  %v2022_v31 = vadd.f32 %v4884_v61, %v2021_v60  ;;  %v2354_v7 = vmax.f32 %v2030_v32, 0.0 }
 0x21a   : > { %v4079_v56 = vpop.f32.mrf.mxu1 }
 0x21b   : > { %v2033_v5 = vadd.f32 %v4079_v56, %v4884_v61  ;;  %4208 = vmatprep.mubr.msk.bf16.mxu0 %vm2523_vm1, %v2448_v36  ;;  %v2352_v12 = vmax.f32 %v2022_v31, 0.0 }
 0x21c   : > { %v2024_v16 = vpop.f32.mrf.mxu1  ;;  %4209 = vmatmul.mubr.msk.bf16.gmra.mxu0 %vm2523_vm1, %v2449_v35 }
 0x21d   : > { %v2025_v37 = vadd.f32 %v4884_v61, %v2024_v16  ;;  %v2355_v39 = vmax.f32 %v2033_v5, 0.0 }
 0x21e   : > { %v4082_v54 = vpop.f32.mrf.mxu1 }
 0x21f   : > { %v2353_v44 = vmax.f32 %v2025_v37, 0.0  ;;  %v2451_v52 = vpack.c.bf16 %v2355_v39, %v2354_v7  ;;  %v2046_v49 = vadd.f32 %v4082_v54, %v4884_v61 }
 0x220   : > { %v2037_v19 = vpop.f32.mrf.mxu1 }
 0x221   : > { %v2450_v50 = vpack.c.bf16 %v2353_v44, %v2352_v12  ;;  %v2038_v18 = vadd.f32 %v4884_v61, %v2037_v19  ;;  %v2358_v51 = vmax.f32 %v2046_v49, 0.0 }
 0x222   : > { %v4083_v9 = vpop.f32.mrf.mxu1 }
 0x223   : > { %v2049_v57 = vadd.f32 %v4083_v9, %v4884_v61  ;;  %4212 = vmatprep.mubr.msk.bf16.mxu0 %vm2523_vm1, %v2450_v50  ;;  %v2356_v0 = vmax.f32 %v2038_v18, 0.0 }
 0x224   : > { %v2040_v26 = vpop.f32.mrf.mxu1  ;;  %4213 = vmatmul.mubr.msk.bf16.gmra.mxu0 %vm2523_vm1, %v2451_v52 }
 0x225   : > { %v2041_v15 = vadd.f32 %v4884_v61, %v2040_v26  ;;  %v2359_v29 = vmax.f32 %v2049_v57, 0.0 }
 0x226   : > { %v4086_v43 = vpop.f32.mrf.mxu1 }
 0x227   : > { %v2357_v25 = vmax.f32 %v2041_v15, 0.0  ;;  %v2453_v40 = vpack.c.bf16 %v2359_v29, %v2358_v51  ;;  %v2062_v2 = vadd.f32 %v4086_v43, %v4884_v61 }
 0x228   : > { %v2053_v22 = vpop.f32.mrf.mxu1 }
 0x229   : > { %v2452_v1 = vpack.c.bf16 %v2357_v25, %v2356_v0  ;;  %v2054_v47 = vadd.f32 %v4884_v61, %v2053_v22  ;;  %v2362_v23 = vmax.f32 %v2062_v2, 0.0 }
 0x22a   : > { %v4087_v59 = vpop.f32.mrf.mxu1 }
 0x22b   : > { %v2065_v53 = vadd.f32 %v4087_v59, %v4884_v61  ;;  %4216 = vmatprep.mubr.msk.bf16.mxu0 %vm2523_vm1, %v2452_v1  ;;  %v2360_v55 = vmax.f32 %v2054_v47, 0.0 }
 0x22c   : > { %v2056_v17 = vpop.f32.mrf.mxu1  ;;  %4217 = vmatmul.mubr.msk.bf16.gmra.mxu0 %vm2523_vm1, %v2453_v40 }
 0x22d   : > { %v2057_v4 = vadd.f32 %v4884_v61, %v2056_v17  ;;  %v2363_v3 = vmax.f32 %v2065_v53, 0.0 }
 0x22e   : > { %v4090_v41 = vpop.f32.mrf.mxu1 }
 0x22f   : > { %v2361_v10 = vmax.f32 %v2057_v4, 0.0  ;;  %v2455_v46 = vpack.c.bf16 %v2363_v3, %v2362_v23  ;;  %v2078_v14 = vadd.f32 %v4090_v41, %v4884_v61 }
 0x230   : > { %v2069_v30 = vpop.f32.mrf.mxu1 }
 0x231   : > { %v2454_v13 = vpack.c.bf16 %v2361_v10, %v2360_v55  ;;  %v2070_v42 = vadd.f32 %v4884_v61, %v2069_v30  ;;  %v2366_v58 = vmax.f32 %v2078_v14, 0.0 }
 0x232   : > { %v4091_v34 = vpop.f32.mrf.mxu1 }
 0x233   : > { %v2081_v45 = vadd.f32 %v4091_v34, %v4884_v61  ;;  %4220 = vmatprep.mubr.msk.bf16.mxu0 %vm2523_vm1, %v2454_v13  ;;  %v2364_v62 = vmax.f32 %v2070_v42, 0.0 }
 0x234   : > { %v2072_v11 = vpop.f32.mrf.mxu1  ;;  %4221 = vmatmul.mubr.msk.bf16.gmra.mxu0 %vm2523_vm1, %v2455_v46 }
 0x235   : > { %v2073_v38 = vadd.f32 %v4884_v61, %v2072_v11  ;;  %v2367_v48 = vmax.f32 %v2081_v45, 0.0 }
 0x236   : > { %v4094_v20 = vpop.f32.mrf.mxu1 }
 0x237   : > { %v2365_v6 = vmax.f32 %v2073_v38, 0.0  ;;  %v2457_v24 = vpack.c.bf16 %v2367_v48, %v2366_v58  ;;  %v2094_v8 = vadd.f32 %v4094_v20, %v4884_v61 }
 0x238   : > { %v2085_v63 = vpop.f32.mrf.mxu1 }
 0x239   : > { %v2456_v21 = vpack.c.bf16 %v2365_v6, %v2364_v62  ;;  %v2086_v28 = vadd.f32 %v4884_v61, %v2085_v63  ;;  %v2370_v32 = vmax.f32 %v2094_v8, 0.0 }
 0x23a   : > { %v4095_v33 = vpop.f32.mrf.mxu1 }
 0x23b   : > { %v2097_v27 = vadd.f32 %v4095_v33, %v4884_v61  ;;  %4224 = vmatprep.mubr.msk.bf16.mxu0 %vm2523_vm1, %v2456_v21  ;;  %v2368_v31 = vmax.f32 %v2086_v28, 0.0 }
 0x23c   : > { %v2088_v60 = vpop.f32.mrf.mxu1  ;;  %4225 = vmatmul.mubr.msk.bf16.gmra.mxu0 %vm2523_vm1, %v2457_v24 }
 0x23d   : > { %v2089_v36 = vadd.f32 %v4884_v61, %v2088_v60  ;;  %v2371_v35 = vmax.f32 %v2097_v27, 0.0 }
 0x23e   : > { %v4098_v56 = vpop.f32.mrf.mxu1 }
 0x23f   : > { %v2369_v5 = vmax.f32 %v2089_v36, 0.0  ;;  %v2459_v39 = vpack.c.bf16 %v2371_v35, %v2370_v32  ;;  %v2110_v7 = vadd.f32 %v4098_v56, %v4884_v61 }
 0x240   : > { %v2101_v16 = vpop.f32.mrf.mxu1 }
 0x241   : > { %v2458_v37 = vpack.c.bf16 %v2369_v5, %v2368_v31  ;;  %v2102_v12 = vadd.f32 %v4884_v61, %v2101_v16  ;;  %v2374_v49 = vmax.f32 %v2110_v7, 0.0 }
 0x242   : > { %v4099_v54 = vpop.f32.mrf.mxu1 }
 0x243   : > { %v2113_v44 = vadd.f32 %v4099_v54, %v4884_v61  ;;  %4228 = vmatprep.mubr.msk.bf16.mxu0 %vm2523_vm1, %v2458_v37  ;;  %v2372_v18 = vmax.f32 %v2102_v12, 0.0 }
 0x244   : > { %v2104_v19 = vpop.f32.mrf.mxu1  ;;  %4229 = vmatmul.mubr.msk.bf16.gmra.mxu0 %vm2523_vm1, %v2459_v39 }
 0x245   : > { %v2105_v50 = vadd.f32 %v4884_v61, %v2104_v19  ;;  %v2375_v52 = vmax.f32 %v2113_v44, 0.0 }
 0x246   : > { %v4102_v9 = vpop.f32.mrf.mxu1 }
 0x247   : > { %v2373_v57 = vmax.f32 %v2105_v50, 0.0  ;;  %v2461_v29 = vpack.c.bf16 %v2375_v52, %v2374_v49  ;;  %v2126_v51 = vadd.f32 %v4102_v9, %v4884_v61 }
 0x248   : > { %v2117_v26 = vpop.f32.mrf.mxu1 }
 0x249   : > { %v2460_v15 = vpack.c.bf16 %v2373_v57, %v2372_v18  ;;  %v2118_v0 = vadd.f32 %v4884_v61, %v2117_v26  ;;  %v2378_v2 = vmax.f32 %v2126_v51, 0.0  ;;  %v5087_v18 = vld [vmem:[%s5536_s6] ss:$0 sm:$0xff] }
 0x24a   : > { %v4103_v43 = vpop.f32.mrf.mxu1 }
 0x24b   : > { %v2129_v25 = vadd.f32 %v4103_v43, %v4884_v61  ;;  %4232 = vmatprep.mubr.msk.bf16.mxu0 %vm2523_vm1, %v2460_v15  ;;  %v2376_v47 = vmax.f32 %v2118_v0, 0.0 }
 0x24c   : > { %v2120_v22 = vpop.f32.mrf.mxu1  ;;  %4233 = vmatmul.mubr.msk.bf16.gmra.mxu0 %vm2523_vm1, %v2461_v29 }
 0x24d   : > { %v2121_v1 = vadd.f32 %v4884_v61, %v2120_v22  ;;  %v2379_v40 = vmax.f32 %v2129_v25, 0.0 }
 0x24e   : > { %v4106_v59 = vpop.f32.mrf.mxu1 }
 0x24f   : > { %v2377_v53 = vmax.f32 %v2121_v1, 0.0  ;;  %v2463_v3 = vpack.c.bf16 %v2379_v40, %v2378_v2  ;;  %v2142_v23 = vadd.f32 %v4106_v59, %v4884_v61 }
 0x250   : > { %v2133_v17 = vpop.f32.mrf.mxu1 }
 0x251   : > { %v2462_v4 = vpack.c.bf16 %v2377_v53, %v2376_v47  ;;  %v2134_v55 = vadd.f32 %v4884_v61, %v2133_v17  ;;  %v2382_v14 = vmax.f32 %v2142_v23, 0.0 }
 0x252   : > { %v4107_v41 = vpop.f32.mrf.mxu1 }
 0x253   : > { %v2145_v10 = vadd.f32 %v4107_v41, %v4884_v61  ;;  %4236 = vmatprep.mubr.msk.bf16.mxu0 %vm2523_vm1, %v2462_v4  ;;  %v2380_v42 = vmax.f32 %v2134_v55, 0.0 }
 0x254   : > { %v2136_v30 = vpop.f32.mrf.mxu1  ;;  %4237 = vmatmul.mubr.msk.bf16.gmra.mxu0 %vm2523_vm1, %v2463_v3 }
 0x255   : > { %v2137_v13 = vadd.f32 %v4884_v61, %v2136_v30  ;;  %v2383_v46 = vmax.f32 %v2145_v10, 0.0 }
 0x256   : > { %v4110_v34 = vpop.f32.mrf.mxu1 }
 0x257   : > { %v2381_v45 = vmax.f32 %v2137_v13, 0.0  ;;  %v2465_v48 = vpack.c.bf16 %v2383_v46, %v2382_v14  ;;  %v2158_v58 = vadd.f32 %v4110_v34, %v4884_v61 }
 0x258   : > { %v2149_v11 = vpop.f32.mrf.mxu1 }
 0x259   : > { %v2464_v38 = vpack.c.bf16 %v2381_v45, %v2380_v42  ;;  %v2150_v62 = vadd.f32 %v4884_v61, %v2149_v11  ;;  %v2386_v8 = vmax.f32 %v2158_v58, 0.0 }
 0x25a   : > { %v4111_v20 = vpop.f32.mrf.mxu1 }
 0x25b   : > { %v2161_v6 = vadd.f32 %v4111_v20, %v4884_v61  ;;  %4240 = vmatprep.mubr.msk.bf16.mxu0 %vm2523_vm1, %v2464_v38  ;;  %v2384_v28 = vmax.f32 %v2150_v62, 0.0 }
 0x25c   : > { %v2152_v63 = vpop.f32.mrf.mxu1  ;;  %4241 = vmatmul.mubr.msk.bf16.gmra.mxu0 %vm2523_vm1, %v2465_v48 }
 0x25d   : > { %v2153_v21 = vadd.f32 %v4884_v61, %v2152_v63  ;;  %v2387_v24 = vmax.f32 %v2161_v6, 0.0 }
 0x25e   : > { %v4114_v33 = vpop.f32.mrf.mxu1 }
 0x25f   : > { %v2385_v27 = vmax.f32 %v2153_v21, 0.0  ;;  %v2467_v35 = vpack.c.bf16 %v2387_v24, %v2386_v8  ;;  %v2174_v32 = vadd.f32 %v4114_v33, %v4884_v61 }
 0x260   : > { %v2165_v60 = vpop.f32.mrf.mxu1 }
 0x261   : > { %v2466_v36 = vpack.c.bf16 %v2385_v27, %v2384_v28  ;;  %v2166_v31 = vadd.f32 %v4884_v61, %v2165_v60  ;;  %v2390_v7 = vmax.f32 %v2174_v32, 0.0  ;;  %v5128_v27 = vld [vmem:[%s5534_s4] ss:$0 sm:$0xff] }
 0x262   : > { %v4115_v56 = vpop.f32.mrf.mxu1 }
 0x263   : > { %v2177_v5 = vadd.f32 %v4115_v56, %v4884_v61  ;;  %4244 = vmatprep.mubr.msk.bf16.mxu0 %vm2523_vm1, %v2466_v36  ;;  %v2388_v12 = vmax.f32 %v2166_v31, 0.0 }
 0x264   : > { %v2168_v16 = vpop.f32.mrf.mxu1  ;;  %4245 = vmatmul.mubr.msk.bf16.gmra.mxu0 %vm2523_vm1, %v2467_v35 }
 0x265   : > { %v2169_v37 = vadd.f32 %v4884_v61, %v2168_v16  ;;  %v2391_v39 = vmax.f32 %v2177_v5, 0.0 }
 0x266   : > { %v4118_v54 = vpop.f32.mrf.mxu1 }
 0x267   : > { %v2389_v44 = vmax.f32 %v2169_v37, 0.0  ;;  %v2469_v52 = vpack.c.bf16 %v2391_v39, %v2390_v7  ;;  %v2190_v26 = vadd.f32 %v4118_v54, %v4884_v61 }
 0x268   : > { %v2181_v19 = vpop.f32.mrf.mxu1 }
 0x269   : > { %v2468_v50 = vpack.c.bf16 %v2389_v44, %v2388_v12  ;;  %v2182_v57 = vadd.f32 %v4884_v61, %v2181_v19  ;;  %v2394_v47 = vmax.f32 %v2190_v26, 0.0 }
 0x26a   : > { %v4119_v9 = vpop.f32.mrf.mxu1 }
 0x26b   : > { %v2193_v49 = vadd.f32 %v4119_v9, %v4884_v61  ;;  %4248 = vmatprep.mubr.msk.bf16.mxu0 %vm2523_vm1, %v2468_v50  ;;  %v2392_v1 = vmax.f32 %v2182_v57, 0.0 }
 0x26c   : > { %v2184_v15 = vpop.f32.mrf.mxu1  ;;  %v4154_v29 = vpop.f32.mrf.mxu0  ;;  %4249 = vmatmul.mubr.msk.bf16.gmra.mxu0 %vm2523_vm1, %v2469_v52 }
 0x26d   : > { %v2185_v43 = vadd.f32 %v4884_v61, %v2184_v15  ;;  %v2759_v0 = vadd.f32 %v4154_v29, %v5087_v18  ;;  %v2395_v25 = vmax.f32 %v2193_v49, 0.0 }
 0x26e   : > { %v4122_v51 = vpop.f32.mrf.mxu1  ;;  %v2750_v22 = vpop.f32.mrf.mxu0 }
 0x26f   : > { %v2393_v40 = vmax.f32 %v2185_v43, 0.0  ;;  %3264 = vst.msk [vmem:[%s5096_s28 + $0x10] sm:$0xff] %vm3261_vm2, %v2759_v0  ;;  %v2751_v59 = vadd.f32 %v5087_v18, %v2750_v22  ;;  %v2471_v3 = vpack.c.bf16 %v2395_v25, %v2394_v47  ;;  %v2206_v13 = vadd.f32 %v4122_v51, %v4884_v61 }
 0x270   : > { %v2197_v53 = vpop.f32.mrf.mxu1  ;;  %v4155_v2 = vpop.f32.mrf.mxu0 }
 0x271   : > { %v2470_v17 = vpack.c.bf16 %v2393_v40, %v2392_v1  ;;  %3262 = vst.msk [vmem:[%s5096_s28] sm:$0xff] %vm3261_vm2, %v2751_v59  ;;  %v2762_v4 = vadd.f32 %v4155_v2, %v5087_v18  ;;  %v2198_v10 = vadd.f32 %v4884_v61, %v2197_v53  ;;  %v2398_v6 = vmax.f32 %v2206_v13, 0.0 }
 0x272   : > { %v4123_v41 = vpop.f32.mrf.mxu1  ;;  %v2753_v55 = vpop.f32.mrf.mxu0 }
 0x273   : > { %3265 = vst.msk [vmem:[%s5096_s28 + $0x18] sm:$0xff] %vm3261_vm2, %v2762_v4  ;;  %v2209_v23 = vadd.f32 %v4123_v41, %v4884_v61  ;;  %v2754_v30 = vadd.f32 %v5087_v18, %v2753_v55  ;;  %4252 = vmatprep.mubr.msk.bf16.mxu0 %vm2523_vm1, %v2470_v17  ;;  %v2396_v48 = vmax.f32 %v2198_v10, 0.0 }
 0x274   : > { %v2200_v46 = vpop.f32.mrf.mxu1  ;;  %v4158_v34 = vpop.f32.mrf.mxu0  ;;  %4253 = vmatmul.mubr.msk.bf16.gmra.mxu0 %vm2523_vm1, %v2471_v3 }
 0x275   : > { %3263 = vst.msk [vmem:[%s5096_s28 + $0x8] sm:$0xff] %vm3261_vm2, %v2754_v30  ;;  %v2201_v42 = vadd.f32 %v4884_v61, %v2200_v46  ;;  %v2775_v45 = vadd.f32 %v4158_v34, %v5087_v18  ;;  %v2399_v14 = vmax.f32 %v2209_v23, 0.0 }
 0x276   : > { %v4126_v11 = vpop.f32.mrf.mxu1  ;;  %v2766_v38 = vpop.f32.mrf.mxu0 }
 0x277   : > { %v2397_v20 = vmax.f32 %v2201_v42, 0.0  ;;  %3268 = vst.msk [vmem:[%s5096_s28 + $0x30] sm:$0xff] %vm3261_vm2, %v2775_v45  ;;  %v2767_v62 = vadd.f32 %v5087_v18, %v2766_v38  ;;  %v2473_v24 = vpack.c.bf16 %v2399_v14, %v2398_v6  ;;  %v2222_v35 = vadd.f32 %v5128_v27, %v4126_v11 }
 0x278   : > { %v2213_v58 = vpop.f32.mrf.mxu1  ;;  %v4159_v63 = vpop.f32.mrf.mxu0 }
 0x279   : > { %v2472_v21 = vpack.c.bf16 %v2397_v20, %v2396_v48  ;;  %3266 = vst.msk [vmem:[%s5096_s28 + $0x20] sm:$0xff] %vm3261_vm2, %v2767_v62  ;;  %v2778_v61 = vadd.f32 %v4159_v63, %v5087_v18  ;;  %v2214_v8 = vadd.f32 %v5128_v27, %v2213_v58  ;;  %v2402_v7 = vmax.f32 %v2222_v35, 0.0 }
 0x27a   : > { %v4127_v33 = vpop.f32.mrf.mxu1  ;;  %v2769_v28 = vpop.f32.mrf.mxu0 }
 0x27b   : > { %3269 = vst.msk [vmem:[%s5096_s28 + $0x38] sm:$0xff] %vm3261_vm2, %v2778_v61  ;;  %v2225_v60 = vadd.f32 %v5128_v27, %v4127_v33  ;;  %v2770_v36 = vadd.f32 %v5087_v18, %v2769_v28  ;;  %4256 = vmatprep.mubr.msk.bf16.mxu0 %vm2523_vm1, %v2472_v21  ;;  %v2400_v54 = vmax.f32 %v2214_v8, 0.0 }
 0x27c   : > { %v2216_v56 = vpop.f32.mrf.mxu1  ;;  %v4162_v31 = vpop.f32.mrf.mxu0  ;;  %4257 = vmatmul.mubr.msk.bf16.gmra.mxu0 %vm2523_vm1, %v2473_v24 }
 0x27d   : > { %3267 = vst.msk [vmem:[%s5096_s28 + $0x28] sm:$0xff] %vm3261_vm2, %v2770_v36  ;;  %v2217_v5 = vadd.f32 %v5128_v27, %v2216_v56  ;;  %v2791_v32 = vadd.f32 %v4162_v31, %v5087_v18  ;;  %v2403_v16 = vmax.f32 %v2225_v60, 0.0 }
 0x27e   : > { %v4130_v37 = vpop.f32.mrf.mxu1  ;;  %v2782_v39 = vpop.f32.mrf.mxu0 }
 0x27f   : > { %v2401_v12 = vmax.f32 %v2217_v5, 0.0  ;;  %3272 = vst.msk [vmem:[%s5096_s28 + $0x50] sm:$0xff] %vm3261_vm2, %v2791_v32  ;;  %v2783_v44 = vadd.f32 %v5087_v18, %v2782_v39  ;;  %v2475_v57 = vpack.c.bf16 %v2403_v16, %v2402_v7  ;;  %v2238_v0 = vadd.f32 %v5128_v27, %v4130_v37 }
 0x280   : > { %v2229_v19 = vpop.f32.mrf.mxu1  ;;  %v4163_v50 = vpop.f32.mrf.mxu0 }
 0x281   : > { %v2474_v52 = vpack.c.bf16 %v2401_v12, %v2400_v54  ;;  %3270 = vst.msk [vmem:[%s5096_s28 + $0x40] sm:$0xff] %vm3261_vm2, %v2783_v44  ;;  %v2794_v9 = vadd.f32 %v4163_v50, %v5087_v18  ;;  %v2230_v15 = vadd.f32 %v5128_v27, %v2229_v19  ;;  %v2406_v4 = vmax.f32 %v2238_v0, 0.0 }
 0x282   : > { %v4131_v49 = vpop.f32.mrf.mxu1  ;;  %v2785_v26 = vpop.f32.mrf.mxu0 }
 0x283   : > { %3273 = vst.msk [vmem:[%s5096_s28 + $0x58] sm:$0xff] %vm3261_vm2, %v2794_v9  ;;  %v2241_v29 = vadd.f32 %v5128_v27, %v4131_v49  ;;  %v2786_v43 = vadd.f32 %v5087_v18, %v2785_v26  ;;  %4260 = vmatprep.mubr.msk.bf16.mxu0 %vm2523_vm1, %v2474_v52  ;;  %v2404_v53 = vmax.f32 %v2230_v15, 0.0 }
 0x284   : > { %v2232_v25 = vpop.f32.mrf.mxu1  ;;  %v4166_v51 = vpop.f32.mrf.mxu0  ;;  %4261 = vmatmul.mubr.msk.bf16.gmra.mxu0 %vm2523_vm1, %v2475_v57 }
 0x285   : > { %3271 = vst.msk [vmem:[%s5096_s28 + $0x48] sm:$0xff] %vm3261_vm2, %v2786_v43  ;;  %v2233_v22 = vadd.f32 %v5128_v27, %v2232_v25  ;;  %v2807_v1 = vadd.f32 %v4166_v51, %v5087_v18  ;;  %v2407_v40 = vmax.f32 %v2241_v29, 0.0 }
 0x286   : > { %v4134_v59 = vpop.f32.mrf.mxu1  ;;  %v2798_v47 = vpop.f32.mrf.mxu0 }
 0x287   : > { %v2405_v2 = vmax.f32 %v2233_v22, 0.0  ;;  %3276 = vst.msk [vmem:[%s5096_s28 + $0x70] sm:$0xff] %vm3261_vm2, %v2807_v1  ;;  %v2799_v17 = vadd.f32 %v5087_v18, %v2798_v47  ;;  %v2477_v23 = vpack.c.bf16 %v2407_v40, %v2406_v4  ;;  %v2254_v45 = vadd.f32 %v5128_v27, %v4134_v59 }
 0x288   : > { %v2245_v3 = vpop.f32.mrf.mxu1  ;;  %v4167_v41 = vpop.f32.mrf.mxu0 }
 0x289   : > { %v2476_v55 = vpack.c.bf16 %v2405_v2, %v2404_v53  ;;  %3274 = vst.msk [vmem:[%s5096_s28 + $0x60] sm:$0xff] %vm3261_vm2, %v2799_v17  ;;  %v2810_v10 = vadd.f32 %v4167_v41, %v5087_v18  ;;  %v2246_v46 = vadd.f32 %v5128_v27, %v2245_v3  ;;  %v2410_v61 = vmax.f32 %v2254_v45, 0.0 }
 0x28a   : > { %v4135_v30 = vpop.f32.mrf.mxu1  ;;  %v2801_v13 = vpop.f32.mrf.mxu0 }
 0x28b   : > { %3277 = vst.msk [vmem:[%s5096_s28 + $0x78] sm:$0xff] %vm3261_vm2, %v2810_v10  ;;  %v2257_v34 = vadd.f32 %v5128_v27, %v4135_v30  ;;  %v2802_v42 = vadd.f32 %v5087_v18, %v2801_v13  ;;  %4264 = vmatprep.mubr.msk.bf16.mxu0 %vm2523_vm1, %v2476_v55  ;;  %v2408_v58 = vmax.f32 %v2246_v46, 0.0 }
 0x28c   : > { %v2248_v14 = vpop.f32.mrf.mxu1  ;;  %v4170_v11 = vpop.f32.mrf.mxu0  ;;  %4265 = vmatmul.mubr.msk.bf16.gmra.mxu0 %vm2523_vm1, %v2477_v23 }
 0x28d   : > { %3275 = vst.msk [vmem:[%s5096_s28 + $0x68] sm:$0xff] %vm3261_vm2, %v2802_v42  ;;  %v2249_v38 = vadd.f32 %v5128_v27, %v2248_v14  ;;  %v2823_v48 = vadd.f32 %v4170_v11, %v5087_v18  ;;  %v2411_v20 = vmax.f32 %v2257_v34, 0.0 }
 0x28e   : > { %v4138_v62 = vpop.f32.mrf.mxu1  ;;  %v2814_v6 = vpop.f32.mrf.mxu0 }
 0x28f   : > { %v2409_v63 = vmax.f32 %v2249_v38, 0.0  ;;  %3280 = vst.msk [vmem:[%s5096_s28 + $0x90] sm:$0xff] %vm3261_vm2, %v2823_v48  ;;  %v2815_v21 = vadd.f32 %v5087_v18, %v2814_v6  ;;  %v2479_v60 = vpack.c.bf16 %v2411_v20, %v2410_v61  ;;  %v2270_v32 = vadd.f32 %v5128_v27, %v4138_v62 }
 0x290   : > { %v2261_v24 = vpop.f32.mrf.mxu1  ;;  %v4171_v33 = vpop.f32.mrf.mxu0 }
 0x291   : > { %v2478_v28 = vpack.c.bf16 %v2409_v63, %v2408_v58  ;;  %3278 = vst.msk [vmem:[%s5096_s28 + $0x80] sm:$0xff] %vm3261_vm2, %v2815_v21  ;;  %v2826_v8 = vadd.f32 %v4171_v33, %v5087_v18  ;;  %v2262_v56 = vadd.f32 %v5128_v27, %v2261_v24  ;;  %v2414_v9 = vmax.f32 %v2270_v32, 0.0 }
 0x292   : > { %v4139_v36 = vpop.f32.mrf.mxu1  ;;  %v2817_v35 = vpop.f32.mrf.mxu0 }
 0x293   : > { %3281 = vst.msk [vmem:[%s5096_s28 + $0x98] sm:$0xff] %vm3261_vm2, %v2826_v8  ;;  %v2273_v31 = vadd.f32 %v5128_v27, %v4139_v36  ;;  %v2818_v5 = vadd.f32 %v5087_v18, %v2817_v35  ;;  %4268 = vmatprep.mubr.msk.bf16.mxu0 %vm2523_vm1, %v2478_v28  ;;  %v2412_v19 = vmax.f32 %v2262_v56, 0.0 }
 0x294   : > { %v2264_v16 = vpop.f32.mrf.mxu1  ;;  %v4174_v37 = vpop.f32.mrf.mxu0  ;;  %4269 = vmatmul.mubr.msk.bf16.gmra.mxu0 %vm2523_vm1, %v2479_v60 }
 0x295   : > { %3279 = vst.msk [vmem:[%s5096_s28 + $0x88] sm:$0xff] %vm3261_vm2, %v2818_v5  ;;  %v2265_v39 = vadd.f32 %v5128_v27, %v2264_v16  ;;  %v2839_v54 = vadd.f32 %v4174_v37, %v5087_v18  ;;  %v2415_v12 = vmax.f32 %v2273_v31, 0.0 }
 0x296   : > { %v4142_v44 = vpop.f32.mrf.mxu1  ;;  %v2830_v7 = vpop.f32.mrf.mxu0 }
 0x297   : > { %v2413_v50 = vmax.f32 %v2265_v39, 0.0  ;;  %3284 = vst.msk [vmem:[%s5096_s28 + $0xb0] sm:$0xff] %vm3261_vm2, %v2839_v54  ;;  %v2831_v52 = vadd.f32 %v5087_v18, %v2830_v7  ;;  %v2481_v29 = vpack.c.bf16 %v2415_v12, %v2414_v9  ;;  %v2286_v1 = vadd.f32 %v5128_v27, %v4142_v44 }
 0x298   : > { %v2277_v57 = vpop.f32.mrf.mxu1  ;;  %v4175_v49 = vpop.f32.mrf.mxu0 }
 0x299   : > { %v2480_v26 = vpack.c.bf16 %v2413_v50, %v2412_v19  ;;  %3282 = vst.msk [vmem:[%s5096_s28 + $0xa0] sm:$0xff] %vm3261_vm2, %v2831_v52  ;;  %v2842_v15 = vadd.f32 %v4175_v49, %v5087_v18  ;;  %v2278_v25 = vadd.f32 %v5128_v27, %v2277_v57  ;;  %v2418_v55 = vmax.f32 %v2286_v1, 0.0 }
 0x29a   : > { %v4143_v43 = vpop.f32.mrf.mxu1  ;;  %v2833_v0 = vpop.f32.mrf.mxu0 }
 0x29b   : > { %3285 = vst.msk [vmem:[%s5096_s28 + $0xb8] sm:$0xff] %vm3261_vm2, %v2842_v15  ;;  %v2289_v51 = vadd.f32 %v5128_v27, %v4143_v43  ;;  %v2834_v22 = vadd.f32 %v5087_v18, %v2833_v0  ;;  %4272 = vmatprep.mubr.msk.bf16.mxu0 %vm2523_vm1, %v2480_v26  ;;  %v2416_v4 = vmax.f32 %v2278_v25, 0.0 }
 0x29c   : > { %v2280_v40 = vpop.f32.mrf.mxu1  ;;  %v4178_v59 = vpop.f32.mrf.mxu0  ;;  %4273 = vmatmul.mubr.msk.bf16.gmra.mxu0 %vm2523_vm1, %v2481_v29 }
 0x29d   : > { %3283 = vst.msk [vmem:[%s5096_s28 + $0xa8] sm:$0xff] %vm3261_vm2, %v2834_v22  ;;  %v2281_v47 = vadd.f32 %v5128_v27, %v2280_v40  ;;  %v2855_v53 = vadd.f32 %v4178_v59, %v5087_v18  ;;  %v2419_v2 = vmax.f32 %v2289_v51, 0.0 }
 0x29e   : > { %v2846_v17 = vpop.f32.mrf.mxu0 }
 0x29f   : > { %v2417_v3 = vmax.f32 %v2281_v47, 0.0  ;;  %3288 = vst.msk [vmem:[%s5096_s28 + $0xd0] sm:$0xff] %vm3261_vm2, %v2855_v53  ;;  %v2847_v41 = vadd.f32 %v5087_v18, %v2846_v17  ;;  %v2483_v30 = vpack.c.bf16 %v2419_v2, %v2418_v55 }
 0x2a0   : > { %v4179_v10 = vpop.f32.mrf.mxu0 }
 0x2a1   : > { %v2482_v23 = vpack.c.bf16 %v2417_v3, %v2416_v4  ;;  %3286 = vst.msk [vmem:[%s5096_s28 + $0xc0] sm:$0xff] %vm3261_vm2, %v2847_v41  ;;  %v2858_v27 = vadd.f32 %v4179_v10, %v5087_v18 }
 0x2a2   : > { %v2849_v13 = vpop.f32.mrf.mxu0 }
 0x2a3   : > { %3289 = vst.msk [vmem:[%s5096_s28 + $0xd8] sm:$0xff] %vm3261_vm2, %v2858_v27  ;;  %v2850_v46 = vadd.f32 %v5087_v18, %v2849_v13  ;;  %4276 = vmatprep.mubr.msk.bf16.mxu0 %vm2523_vm1, %v2482_v23 }
 0x2a4   : > { %v4182_v34 = vpop.f32.mrf.mxu0  ;;  %4277 = vmatmul.mubr.msk.bf16.gmra.mxu0 %vm2523_vm1, %v2483_v30 }
 0x2a5   : > { %3287 = vst.msk [vmem:[%s5096_s28 + $0xc8] sm:$0xff] %vm3261_vm2, %v2850_v46  ;;  %v2871_v42 = vadd.f32 %v4182_v34, %v5087_v18 }
 0x2a6   : > { %v2862_v45 = vpop.f32.mrf.mxu0 }
 0x2a7   : > { %3292 = vst.msk [vmem:[%s5096_s28 + $0xf0] sm:$0xff] %vm3261_vm2, %v2871_v42  ;;  %v2863_v14 = vadd.f32 %v5087_v18, %v2862_v45 }
 0x2a8   : > { %v4183_v11 = vpop.f32.mrf.mxu0 }
 0x2a9   : > { %3290 = vst.msk [vmem:[%s5096_s28 + $0xe0] sm:$0xff] %vm3261_vm2, %v2863_v14  ;;  %v2874_v38 = vadd.f32 %v4183_v11, %v5087_v18 }
 0x2aa   : > { %v2865_v48 = vpop.f32.mrf.mxu0 }
 0x2ab   : > { %3293 = vst.msk [vmem:[%s5096_s28 + $0xf8] sm:$0xff] %vm3261_vm2, %v2874_v38  ;;  %v2866_v20 = vadd.f32 %v5087_v18, %v2865_v48 }
 0x2ac   : > { %v4186_v62 = vpop.f32.mrf.mxu0 }
 0x2ad   : > { %3291 = vst.msk [vmem:[%s5096_s28 + $0xe8] sm:$0xff] %vm3261_vm2, %v2866_v20  ;;  %v2887_v6 = vadd.f32 %v4186_v62, %v5087_v18 }
 0x2ae   : > { %v2878_v58 = vpop.f32.mrf.mxu0 }
 0x2af   : > { %3296 = vst.msk [vmem:[%s5096_s28 + $0x110] sm:$0xff] %vm3261_vm2, %v2887_v6  ;;  %v2879_v63 = vadd.f32 %v5087_v18, %v2878_v58 }
 0x2b0   : > { %v4187_v21 = vpop.f32.mrf.mxu0 }
 0x2b1   : > { %3294 = vst.msk [vmem:[%s5096_s28 + $0x100] sm:$0xff] %vm3261_vm2, %v2879_v63  ;;  %v2890_v61 = vadd.f32 %v4187_v21, %v5087_v18 }
 0x2b2   : > { %v2881_v24 = vpop.f32.mrf.mxu0 }
 0x2b3   : > { %3297 = vst.msk [vmem:[%s5096_s28 + $0x118] sm:$0xff] %vm3261_vm2, %v2890_v61  ;;  %v2882_v33 = vadd.f32 %v5087_v18, %v2881_v24 }
 0x2b4   : > { %v4190_v28 = vpop.f32.mrf.mxu0 }
 0x2b5   : > { %3295 = vst.msk [vmem:[%s5096_s28 + $0x108] sm:$0xff] %vm3261_vm2, %v2882_v33  ;;  %v2903_v8 = vadd.f32 %v4190_v28, %v5087_v18 }
 0x2b6   : > { %v2894_v60 = vpop.f32.mrf.mxu0 }
 0x2b7   : > { %3300 = vst.msk [vmem:[%s5096_s28 + $0x130] sm:$0xff] %vm3261_vm2, %v2903_v8  ;;  %v2895_v36 = vadd.f32 %v5087_v18, %v2894_v60 }
 0x2b8   : > { %v4191_v35 = vpop.f32.mrf.mxu0 }
 0x2b9   : > { %3298 = vst.msk [vmem:[%s5096_s28 + $0x120] sm:$0xff] %vm3261_vm2, %v2895_v36  ;;  %v2906_v56 = vadd.f32 %v4191_v35, %v5087_v18 }
 0x2ba   : > { %v2897_v31 = vpop.f32.mrf.mxu0 }
 0x2bb   : > { %3301 = vst.msk [vmem:[%s5096_s28 + $0x138] sm:$0xff] %vm3261_vm2, %v2906_v56  ;;  %v2898_v5 = vadd.f32 %v5087_v18, %v2897_v31 }
 0x2bc   : > { %v4194_v32 = vpop.f32.mrf.mxu0 }
 0x2bd   : > { %3299 = vst.msk [vmem:[%s5096_s28 + $0x128] sm:$0xff] %vm3261_vm2, %v2898_v5  ;;  %v2919_v16 = vadd.f32 %v4194_v32, %v5087_v18 }
 0x2be   : > { %v2910_v37 = vpop.f32.mrf.mxu0 }
 0x2bf   : > { %3304 = vst.msk [vmem:[%s5096_s28 + $0x150] sm:$0xff] %vm3261_vm2, %v2919_v16  ;;  %v2911_v39 = vadd.f32 %v5087_v18, %v2910_v37 }
 0x2c0   : > { %v4195_v54 = vpop.f32.mrf.mxu0 }
 0x2c1   : > { %3302 = vst.msk [vmem:[%s5096_s28 + $0x140] sm:$0xff] %vm3261_vm2, %v2911_v39  ;;  %v2922_v12 = vadd.f32 %v4195_v54, %v5087_v18 }
 0x2c2   : > { %v2913_v44 = vpop.f32.mrf.mxu0 }
 0x2c3   : > { %3305 = vst.msk [vmem:[%s5096_s28 + $0x158] sm:$0xff] %vm3261_vm2, %v2922_v12  ;;  %v2914_v7 = vadd.f32 %v5087_v18, %v2913_v44 }
 0x2c4   : > { %v4198_v19 = vpop.f32.mrf.mxu0 }
 0x2c5   : > { %3303 = vst.msk [vmem:[%s5096_s28 + $0x148] sm:$0xff] %vm3261_vm2, %v2914_v7  ;;  %v2935_v50 = vadd.f32 %v4198_v19, %v5087_v18 }
 0x2c6   : > { %v2926_v52 = vpop.f32.mrf.mxu0 }
 0x2c7   : > { %3308 = vst.msk [vmem:[%s5096_s28 + $0x170] sm:$0xff] %vm3261_vm2, %v2935_v50  ;;  %v2927_v9 = vadd.f32 %v5087_v18, %v2926_v52 }
 0x2c8   : > { %v4199_v57 = vpop.f32.mrf.mxu0 }
 0x2c9   : > { %3306 = vst.msk [vmem:[%s5096_s28 + $0x160] sm:$0xff] %vm3261_vm2, %v2927_v9  ;;  %v2938_v49 = vadd.f32 %v4199_v57, %v5087_v18 }
 0x2ca   : > { %v2929_v26 = vpop.f32.mrf.mxu0 }
 0x2cb   : > { %3309 = vst.msk [vmem:[%s5096_s28 + $0x178] sm:$0xff] %vm3261_vm2, %v2938_v49  ;;  %v2930_v15 = vadd.f32 %v5087_v18, %v2929_v26 }
 0x2cc   : > { %v4202_v29 = vpop.f32.mrf.mxu0 }
 0x2cd   : > { %3307 = vst.msk [vmem:[%s5096_s28 + $0x168] sm:$0xff] %vm3261_vm2, %v2930_v15  ;;  %v2951_v43 = vadd.f32 %v4202_v29, %v5087_v18 }
 0x2ce   : > { %v2942_v0 = vpop.f32.mrf.mxu0 }
 0x2cf   : > { %3312 = vst.msk [vmem:[%s5096_s28 + $0x190] sm:$0xff] %vm3261_vm2, %v2951_v43  ;;  %v2943_v25 = vadd.f32 %v5087_v18, %v2942_v0 }
 0x2d0   : > { %v4203_v51 = vpop.f32.mrf.mxu0 }
 0x2d1   : > { %3310 = vst.msk [vmem:[%s5096_s28 + $0x180] sm:$0xff] %vm3261_vm2, %v2943_v25  ;;  %v2954_v22 = vadd.f32 %v4203_v51, %v5087_v18 }
 0x2d2   : > { %v2945_v1 = vpop.f32.mrf.mxu0 }
 0x2d3   : > { %3313 = vst.msk [vmem:[%s5096_s28 + $0x198] sm:$0xff] %vm3261_vm2, %v2954_v22  ;;  %v2946_v40 = vadd.f32 %v5087_v18, %v2945_v1 }
 0x2d4   : > { %v4206_v59 = vpop.f32.mrf.mxu0 }
 0x2d5   : > { %3311 = vst.msk [vmem:[%s5096_s28 + $0x188] sm:$0xff] %vm3261_vm2, %v2946_v40  ;;  %v2967_v47 = vadd.f32 %v4206_v59, %v5087_v18 }
 0x2d6   : > { %v2958_v53 = vpop.f32.mrf.mxu0 }
 0x2d7   : > { %3316 = vst.msk [vmem:[%s5096_s28 + $0x1b0] sm:$0xff] %vm3261_vm2, %v2967_v47  ;;  %v2959_v2 = vadd.f32 %v5087_v18, %v2958_v53 }
 0x2d8   : > { %v4207_v17 = vpop.f32.mrf.mxu0 }
 0x2d9   : > { %3314 = vst.msk [vmem:[%s5096_s28 + $0x1a0] sm:$0xff] %vm3261_vm2, %v2959_v2  ;;  %v2970_v4 = vadd.f32 %v4207_v17, %v5087_v18 }
 0x2da   : > { %v2961_v3 = vpop.f32.mrf.mxu0 }
 0x2db   : > { %3317 = vst.msk [vmem:[%s5096_s28 + $0x1b8] sm:$0xff] %vm3261_vm2, %v2970_v4  ;;  %v2962_v41 = vadd.f32 %v5087_v18, %v2961_v3 }
 0x2dc   : > { %v4210_v55 = vpop.f32.mrf.mxu0 }
 0x2dd   : > { %3315 = vst.msk [vmem:[%s5096_s28 + $0x1a8] sm:$0xff] %vm3261_vm2, %v2962_v41  ;;  %v2983_v10 = vadd.f32 %v4210_v55, %v5087_v18 }
 0x2de   : > { %v2974_v23 = vpop.f32.mrf.mxu0 }
 0x2df   : > { %3320 = vst.msk [vmem:[%s5096_s28 + $0x1d0] sm:$0xff] %vm3261_vm2, %v2983_v10  ;;  %v2975_v27 = vadd.f32 %v5087_v18, %v2974_v23 }
 0x2e0   : > { %v4211_v30 = vpop.f32.mrf.mxu0 }
 0x2e1   : > { %3318 = vst.msk [vmem:[%s5096_s28 + $0x1c0] sm:$0xff] %vm3261_vm2, %v2975_v27  ;;  %v2986_v13 = vadd.f32 %v4211_v30, %v5087_v18 }
 0x2e2   : > { %v2977_v46 = vpop.f32.mrf.mxu0 }
 0x2e3   : > { %3321 = vst.msk [vmem:[%s5096_s28 + $0x1d8] sm:$0xff] %vm3261_vm2, %v2986_v13  ;;  %v2978_v34 = vadd.f32 %v5087_v18, %v2977_v46 }
 0x2e4   : > { %v4214_v42 = vpop.f32.mrf.mxu0 }
 0x2e5   : > { %3319 = vst.msk [vmem:[%s5096_s28 + $0x1c8] sm:$0xff] %vm3261_vm2, %v2978_v34  ;;  %v2999_v45 = vadd.f32 %v4214_v42, %v5087_v18 }
 0x2e6   : > { %v2990_v14 = vpop.f32.mrf.mxu0 }
 0x2e7   : > { %3324 = vst.msk [vmem:[%s5096_s28 + $0x1f0] sm:$0xff] %vm3261_vm2, %v2999_v45  ;;  %v2991_v11 = vadd.f32 %v5087_v18, %v2990_v14 }
 0x2e8   : > { %v4215_v38 = vpop.f32.mrf.mxu0 }
 0x2e9   : > { %3322 = vst.msk [vmem:[%s5096_s28 + $0x1e0] sm:$0xff] %vm3261_vm2, %v2991_v11  ;;  %v3002_v48 = vadd.f32 %v4215_v38, %v5087_v18 }
 0x2ea   : > { %v2993_v20 = vpop.f32.mrf.mxu0 }
 0x2eb   : > { %3325 = vst.msk [vmem:[%s5096_s28 + $0x1f8] sm:$0xff] %vm3261_vm2, %v3002_v48  ;;  %v2994_v62 = vadd.f32 %v5087_v18, %v2993_v20 }
 0x2ec   : > { %v4218_v6 = vpop.f32.mrf.mxu0 }
 0x2ed   : > { %3323 = vst.msk [vmem:[%s5096_s28 + $0x1e8] sm:$0xff] %vm3261_vm2, %v2994_v62  ;;  %v3015_v58 = vadd.f32 %v4218_v6, %v5087_v18 }
 0x2ee   : > { %v3006_v63 = vpop.f32.mrf.mxu0 }
 0x2ef   : > { %3328 = vst.msk [vmem:[%s5096_s28 + $0x210] sm:$0xff] %vm3261_vm2, %v3015_v58  ;;  %v3007_v21 = vadd.f32 %v5087_v18, %v3006_v63 }
 0x2f0   : > { %v4219_v61 = vpop.f32.mrf.mxu0 }
 0x2f1   : > { %3326 = vst.msk [vmem:[%s5096_s28 + $0x200] sm:$0xff] %vm3261_vm2, %v3007_v21  ;;  %v3018_v24 = vadd.f32 %v4219_v61, %v5087_v18 }
 0x2f2   : > { %v3009_v33 = vpop.f32.mrf.mxu0 }
 0x2f3   : > { %3329 = vst.msk [vmem:[%s5096_s28 + $0x218] sm:$0xff] %vm3261_vm2, %v3018_v24  ;;  %v3010_v28 = vadd.f32 %v5087_v18, %v3009_v33 }
 0x2f4   : > { %v4222_v8 = vpop.f32.mrf.mxu0 }
 0x2f5   : > { %3327 = vst.msk [vmem:[%s5096_s28 + $0x208] sm:$0xff] %vm3261_vm2, %v3010_v28  ;;  %v3031_v60 = vadd.f32 %v4222_v8, %v5087_v18 }
 0x2f6   : > { %v3022_v36 = vpop.f32.mrf.mxu0 }
 0x2f7   : > { %3332 = vst.msk [vmem:[%s5096_s28 + $0x230] sm:$0xff] %vm3261_vm2, %v3031_v60  ;;  %v3023_v35 = vadd.f32 %v5087_v18, %v3022_v36 }
 0x2f8   : > { %v4223_v56 = vpop.f32.mrf.mxu0 }
 0x2f9   : > { %3330 = vst.msk [vmem:[%s5096_s28 + $0x220] sm:$0xff] %vm3261_vm2, %v3023_v35  ;;  %v3034_v31 = vadd.f32 %v4223_v56, %v5087_v18 }
 0x2fa   : > { %v3025_v5 = vpop.f32.mrf.mxu0 }
 0x2fb   : > { %3333 = vst.msk [vmem:[%s5096_s28 + $0x238] sm:$0xff] %vm3261_vm2, %v3034_v31  ;;  %v3026_v32 = vadd.f32 %v5087_v18, %v3025_v5 }
 0x2fc   : > { %v4226_v16 = vpop.f32.mrf.mxu0 }
 0x2fd   : > { %3331 = vst.msk [vmem:[%s5096_s28 + $0x228] sm:$0xff] %vm3261_vm2, %v3026_v32  ;;  %v3047_v37 = vadd.f32 %v4226_v16, %v5087_v18 }
 0x2fe   : > { %v3038_v39 = vpop.f32.mrf.mxu0 }
 0x2ff   : > { %3336 = vst.msk [vmem:[%s5096_s28 + $0x250] sm:$0xff] %vm3261_vm2, %v3047_v37  ;;  %v3039_v54 = vadd.f32 %v5087_v18, %v3038_v39 }
 0x300   : > { %v4227_v12 = vpop.f32.mrf.mxu0 }
 0x301   : > { %3334 = vst.msk [vmem:[%s5096_s28 + $0x240] sm:$0xff] %vm3261_vm2, %v3039_v54  ;;  %v3050_v44 = vadd.f32 %v4227_v12, %v5087_v18 }
 0x302   : > { %v3041_v7 = vpop.f32.mrf.mxu0 }
 0x303   : > { %3337 = vst.msk [vmem:[%s5096_s28 + $0x258] sm:$0xff] %vm3261_vm2, %v3050_v44  ;;  %v3042_v19 = vadd.f32 %v5087_v18, %v3041_v7 }
 0x304   : > { %v4230_v50 = vpop.f32.mrf.mxu0 }
 0x305   : > { %3335 = vst.msk [vmem:[%s5096_s28 + $0x248] sm:$0xff] %vm3261_vm2, %v3042_v19  ;;  %v3063_v52 = vadd.f32 %v4230_v50, %v5087_v18 }
 0x306   : > { %v3054_v9 = vpop.f32.mrf.mxu0 }
 0x307   : > { %3340 = vst.msk [vmem:[%s5096_s28 + $0x270] sm:$0xff] %vm3261_vm2, %v3063_v52  ;;  %v3055_v57 = vadd.f32 %v5087_v18, %v3054_v9 }
 0x308   : > { %v4231_v49 = vpop.f32.mrf.mxu0 }
 0x309   : > { %3338 = vst.msk [vmem:[%s5096_s28 + $0x260] sm:$0xff] %vm3261_vm2, %v3055_v57  ;;  %v3066_v26 = vadd.f32 %v4231_v49, %v5087_v18 }
 0x30a   : > { %v3057_v15 = vpop.f32.mrf.mxu0 }
 0x30b   : > { %3341 = vst.msk [vmem:[%s5096_s28 + $0x278] sm:$0xff] %vm3261_vm2, %v3066_v26  ;;  %v3058_v29 = vadd.f32 %v5087_v18, %v3057_v15 }
 0x30c   : > { %v4234_v43 = vpop.f32.mrf.mxu0 }
 0x30d   : > { %3339 = vst.msk [vmem:[%s5096_s28 + $0x268] sm:$0xff] %vm3261_vm2, %v3058_v29  ;;  %v3079_v0 = vadd.f32 %v4234_v43, %v5087_v18 }
 0x30e   : > { %v3070_v25 = vpop.f32.mrf.mxu0 }
 0x30f   : > { %3344 = vst.msk [vmem:[%s5096_s28 + $0x290] sm:$0xff] %vm3261_vm2, %v3079_v0  ;;  %v3071_v51 = vadd.f32 %v5087_v18, %v3070_v25 }
 0x310   : > { %v4235_v22 = vpop.f32.mrf.mxu0 }
 0x311   : > { %3342 = vst.msk [vmem:[%s5096_s28 + $0x280] sm:$0xff] %vm3261_vm2, %v3071_v51  ;;  %v3082_v1 = vadd.f32 %v4235_v22, %v5087_v18 }
 0x312   : > { %v3073_v40 = vpop.f32.mrf.mxu0 }
 0x313   : > { %3345 = vst.msk [vmem:[%s5096_s28 + $0x298] sm:$0xff] %vm3261_vm2, %v3082_v1  ;;  %v3074_v59 = vadd.f32 %v5087_v18, %v3073_v40 }
 0x314   : > { %v4238_v47 = vpop.f32.mrf.mxu0 }
 0x315   : > { %3343 = vst.msk [vmem:[%s5096_s28 + $0x288] sm:$0xff] %vm3261_vm2, %v3074_v59  ;;  %v3095_v53 = vadd.f32 %v4238_v47, %v5087_v18 }
 0x316   : > { %v3086_v2 = vpop.f32.mrf.mxu0 }
 0x317   : > { %3348 = vst.msk [vmem:[%s5096_s28 + $0x2b0] sm:$0xff] %vm3261_vm2, %v3095_v53  ;;  %v3087_v17 = vadd.f32 %v5087_v18, %v3086_v2 }
 0x318   : > { %v4239_v4 = vpop.f32.mrf.mxu0 }
 0x319   : > { %3346 = vst.msk [vmem:[%s5096_s28 + $0x2a0] sm:$0xff] %vm3261_vm2, %v3087_v17  ;;  %v3098_v3 = vadd.f32 %v4239_v4, %v5087_v18 }
 0x31a   : > { %v3089_v41 = vpop.f32.mrf.mxu0 }
 0x31b   : > { %3349 = vst.msk [vmem:[%s5096_s28 + $0x2b8] sm:$0xff] %vm3261_vm2, %v3098_v3  ;;  %v3090_v55 = vadd.f32 %v5087_v18, %v3089_v41 }
 0x31c   : > { %v4242_v10 = vpop.f32.mrf.mxu0 }
 0x31d   : > { %3347 = vst.msk [vmem:[%s5096_s28 + $0x2a8] sm:$0xff] %vm3261_vm2, %v3090_v55  ;;  %v3111_v23 = vadd.f32 %v4242_v10, %v5087_v18 }
 0x31e   : > { %v3102_v27 = vpop.f32.mrf.mxu0 }
 0x31f   : > { %3352 = vst.msk [vmem:[%s5096_s28 + $0x2d0] sm:$0xff] %vm3261_vm2, %v3111_v23  ;;  %v3103_v30 = vadd.f32 %v5087_v18, %v3102_v27 }
 0x320   : > { %v4243_v13 = vpop.f32.mrf.mxu0 }
 0x321   : > { %3350 = vst.msk [vmem:[%s5096_s28 + $0x2c0] sm:$0xff] %vm3261_vm2, %v3103_v30  ;;  %v3114_v46 = vadd.f32 %v4243_v13, %v5087_v18 }
 0x322   : > { %v3105_v34 = vpop.f32.mrf.mxu0 }
 0x323   : > { %3353 = vst.msk [vmem:[%s5096_s28 + $0x2d8] sm:$0xff] %vm3261_vm2, %v3114_v46  ;;  %v3106_v42 = vadd.f32 %v5087_v18, %v3105_v34 }
 0x324   : > { %v4246_v45 = vpop.f32.mrf.mxu0 }
 0x325   : > { %3351 = vst.msk [vmem:[%s5096_s28 + $0x2c8] sm:$0xff] %vm3261_vm2, %v3106_v42  ;;  %v3127_v14 = vadd.f32 %v4246_v45, %v5087_v18 }
 0x326   : > { %v3118_v11 = vpop.f32.mrf.mxu0 }
 0x327   : > { %3356 = vst.msk [vmem:[%s5096_s28 + $0x2f0] sm:$0xff] %vm3261_vm2, %v3127_v14  ;;  %v3119_v38 = vadd.f32 %v5087_v18, %v3118_v11 }
 0x328   : > { %v4247_v48 = vpop.f32.mrf.mxu0 }
 0x329   : > { %3354 = vst.msk [vmem:[%s5096_s28 + $0x2e0] sm:$0xff] %vm3261_vm2, %v3119_v38  ;;  %v3130_v20 = vadd.f32 %v4247_v48, %v5087_v18 }
 0x32a   : > { %v3121_v62 = vpop.f32.mrf.mxu0 }
 0x32b   : > { %3357 = vst.msk [vmem:[%s5096_s28 + $0x2f8] sm:$0xff] %vm3261_vm2, %v3130_v20  ;;  %v3122_v6 = vadd.f32 %v5087_v18, %v3121_v62 }
 0x32c   : > { %v4250_v58 = vpop.f32.mrf.mxu0 }
 0x32d   : > { %3355 = vst.msk [vmem:[%s5096_s28 + $0x2e8] sm:$0xff] %vm3261_vm2, %v3122_v6  ;;  %v3143_v63 = vadd.f32 %v4250_v58, %v5087_v18 }
 0x32e   : > { %v3134_v21 = vpop.f32.mrf.mxu0 }
 0x32f   : > { %3360 = vst.msk [vmem:[%s5096_s28 + $0x310] sm:$0xff] %vm3261_vm2, %v3143_v63  ;;  %v3135_v61 = vadd.f32 %v5087_v18, %v3134_v21 }
 0x330   : > { %v4251_v24 = vpop.f32.mrf.mxu0 }
 0x331   : > { %3358 = vst.msk [vmem:[%s5096_s28 + $0x300] sm:$0xff] %vm3261_vm2, %v3135_v61  ;;  %v3146_v33 = vadd.f32 %v4251_v24, %v5087_v18 }
 0x332   : > { %v3137_v28 = vpop.f32.mrf.mxu0 }
 0x333   : > { %3361 = vst.msk [vmem:[%s5096_s28 + $0x318] sm:$0xff] %vm3261_vm2, %v3146_v33  ;;  %v3138_v8 = vadd.f32 %v5087_v18, %v3137_v28 }
 0x334   : > { %v4254_v60 = vpop.f32.mrf.mxu0 }
 0x335   : > { %3359 = vst.msk [vmem:[%s5096_s28 + $0x308] sm:$0xff] %vm3261_vm2, %v3138_v8  ;;  %v3159_v36 = vadd.f32 %v4254_v60, %v5087_v18 }
 0x336   : > { %v3150_v35 = vpop.f32.mrf.mxu0 }
 0x337   : > { %3364 = vst.msk [vmem:[%s5096_s28 + $0x330] sm:$0xff] %vm3261_vm2, %v3159_v36  ;;  %v3151_v56 = vadd.f32 %v5087_v18, %v3150_v35 }
 0x338   : > { %v4255_v31 = vpop.f32.mrf.mxu0 }
 0x339   : > { %3362 = vst.msk [vmem:[%s5096_s28 + $0x320] sm:$0xff] %vm3261_vm2, %v3151_v56  ;;  %v3162_v5 = vadd.f32 %v4255_v31, %v5087_v18 }
 0x33a   : > { %v3153_v32 = vpop.f32.mrf.mxu0 }
 0x33b   : > { %3365 = vst.msk [vmem:[%s5096_s28 + $0x338] sm:$0xff] %vm3261_vm2, %v3162_v5  ;;  %v3154_v16 = vadd.f32 %v5087_v18, %v3153_v32 }
 0x33c   : > { %v4258_v37 = vpop.f32.mrf.mxu0 }
 0x33d   : > { %3363 = vst.msk [vmem:[%s5096_s28 + $0x328] sm:$0xff] %vm3261_vm2, %v3154_v16  ;;  %v3175_v39 = vadd.f32 %v4258_v37, %v5087_v18 }
 0x33e   : > { %v3166_v54 = vpop.f32.mrf.mxu0 }
 0x33f   : > { %3368 = vst.msk [vmem:[%s5096_s28 + $0x350] sm:$0xff] %vm3261_vm2, %v3175_v39  ;;  %v3167_v12 = vadd.f32 %v5087_v18, %v3166_v54 }
 0x340   : > { %v4259_v44 = vpop.f32.mrf.mxu0 }
 0x341   : > { %3366 = vst.msk [vmem:[%s5096_s28 + $0x340] sm:$0xff] %vm3261_vm2, %v3167_v12  ;;  %v3178_v7 = vadd.f32 %v4259_v44, %v5087_v18 }
 0x342   : > { %v3169_v19 = vpop.f32.mrf.mxu0 }
 0x343   : > { %3369 = vst.msk [vmem:[%s5096_s28 + $0x358] sm:$0xff] %vm3261_vm2, %v3178_v7  ;;  %v3170_v50 = vadd.f32 %v5087_v18, %v3169_v19 }
 0x344   : > { %v4262_v52 = vpop.f32.mrf.mxu0 }
 0x345   : > { %3367 = vst.msk [vmem:[%s5096_s28 + $0x348] sm:$0xff] %vm3261_vm2, %v3170_v50  ;;  %v3191_v9 = vadd.f32 %v4262_v52, %v5087_v18 }
 0x346   : > { %v3182_v57 = vpop.f32.mrf.mxu0 }
 0x347   : > { %3372 = vst.msk [vmem:[%s5096_s28 + $0x370] sm:$0xff] %vm3261_vm2, %v3191_v9  ;;  %v3183_v49 = vadd.f32 %v5087_v18, %v3182_v57 }
 0x348   : > { %v4263_v26 = vpop.f32.mrf.mxu0 }
 0x349   : > { %3370 = vst.msk [vmem:[%s5096_s28 + $0x360] sm:$0xff] %vm3261_vm2, %v3183_v49  ;;  %v3194_v15 = vadd.f32 %v4263_v26, %v5087_v18 }
 0x34a   : > { %v3185_v29 = vpop.f32.mrf.mxu0 }
 0x34b   : > { %3373 = vst.msk [vmem:[%s5096_s28 + $0x378] sm:$0xff] %vm3261_vm2, %v3194_v15  ;;  %v3186_v43 = vadd.f32 %v5087_v18, %v3185_v29 }
 0x34c   : > { %v4266_v0 = vpop.f32.mrf.mxu0 }
 0x34d   : > { %3371 = vst.msk [vmem:[%s5096_s28 + $0x368] sm:$0xff] %vm3261_vm2, %v3186_v43  ;;  %v3207_v25 = vadd.f32 %v4266_v0, %v5087_v18 }
 0x34e   : > { %v3198_v51 = vpop.f32.mrf.mxu0 }
 0x34f   : > { %3376 = vst.msk [vmem:[%s5096_s28 + $0x390] sm:$0xff] %vm3261_vm2, %v3207_v25  ;;  %v3199_v22 = vadd.f32 %v5087_v18, %v3198_v51 }
 0x350   : > { %v4267_v1 = vpop.f32.mrf.mxu0 }
 0x351   : > { %3374 = vst.msk [vmem:[%s5096_s28 + $0x380] sm:$0xff] %vm3261_vm2, %v3199_v22  ;;  %v3210_v40 = vadd.f32 %v4267_v1, %v5087_v18 }
 0x352   : > { %v3201_v59 = vpop.f32.mrf.mxu0 }
 0x353   : > { %3377 = vst.msk [vmem:[%s5096_s28 + $0x398] sm:$0xff] %vm3261_vm2, %v3210_v40  ;;  %v3202_v47 = vadd.f32 %v5087_v18, %v3201_v59 }
 0x354   : > { %v4270_v53 = vpop.f32.mrf.mxu0 }
 0x355   : > { %3375 = vst.msk [vmem:[%s5096_s28 + $0x388] sm:$0xff] %vm3261_vm2, %v3202_v47  ;;  %v3223_v2 = vadd.f32 %v4270_v53, %v5087_v18 }
 0x356   : > { %v3214_v17 = vpop.f32.mrf.mxu0 }
 0x357   : > { %3380 = vst.msk [vmem:[%s5096_s28 + $0x3b0] sm:$0xff] %vm3261_vm2, %v3223_v2  ;;  %v3215_v4 = vadd.f32 %v5087_v18, %v3214_v17 }
 0x358   : > { %v4271_v3 = vpop.f32.mrf.mxu0 }
 0x359   : > { %3378 = vst.msk [vmem:[%s5096_s28 + $0x3a0] sm:$0xff] %vm3261_vm2, %v3215_v4  ;;  %v3226_v41 = vadd.f32 %v4271_v3, %v5087_v18 }
 0x35a   : > { %v3217_v55 = vpop.f32.mrf.mxu0 }
 0x35b   : > { %3381 = vst.msk [vmem:[%s5096_s28 + $0x3b8] sm:$0xff] %vm3261_vm2, %v3226_v41  ;;  %v3218_v10 = vadd.f32 %v5087_v18, %v3217_v55 }
 0x35c   : > { %v4274_v23 = vpop.f32.mrf.mxu0 }
 0x35d   : > { %3379 = vst.msk [vmem:[%s5096_s28 + $0x3a8] sm:$0xff] %vm3261_vm2, %v3218_v10  ;;  %v3239_v27 = vadd.f32 %v4274_v23, %v5087_v18 }
 0x35e   : > { %v3230_v30 = vpop.f32.mrf.mxu0 }
 0x35f   : > { %3384 = vst.msk [vmem:[%s5096_s28 + $0x3d0] sm:$0xff] %vm3261_vm2, %v3239_v27  ;;  %v3231_v13 = vadd.f32 %v5087_v18, %v3230_v30 }
 0x360   : > { %v4275_v46 = vpop.f32.mrf.mxu0 }
 0x361   : > { %3382 = vst.msk [vmem:[%s5096_s28 + $0x3c0] sm:$0xff] %vm3261_vm2, %v3231_v13  ;;  %v3242_v34 = vadd.f32 %v4275_v46, %v5087_v18 }
 0x362   : > { %v3233_v42 = vpop.f32.mrf.mxu0 }
 0x363   : > { %3385 = vst.msk [vmem:[%s5096_s28 + $0x3d8] sm:$0xff] %vm3261_vm2, %v3242_v34  ;;  %v3234_v45 = vadd.f32 %v5087_v18, %v3233_v42 }
 0x364   : > { %v4278_v14 = vpop.f32.mrf.mxu0 }
 0x365   : > { %3383 = vst.msk [vmem:[%s5096_s28 + $0x3c8] sm:$0xff] %vm3261_vm2, %v3234_v45  ;;  %v3255_v11 = vadd.f32 %v4278_v14, %v5087_v18 }
 0x366   : > { %v3246_v38 = vpop.f32.mrf.mxu0 }
 0x367   : > { %3388 = vst.msk [vmem:[%s5096_s28 + $0x3f0] sm:$0xff] %vm3261_vm2, %v3255_v11  ;;  %v3247_v48 = vadd.f32 %v5087_v18, %v3246_v38 }
 0x368   : > { %v4279_v20 = vpop.f32.mrf.mxu0 }
 0x369   : > { %3386 = vst.msk [vmem:[%s5096_s28 + $0x3e0] sm:$0xff] %vm3261_vm2, %v3247_v48  ;;  %v3258_v62 = vadd.f32 %v4279_v20, %v5087_v18 }
 0x36a   : > { %v3249_v6 = vpop.f32.mrf.mxu0 }
 0x36b   : > { %3389 = vst.msk [vmem:[%s5096_s28 + $0x3f8] sm:$0xff] %vm3261_vm2, %v3258_v62  ;;  %v3250_v58 = vadd.f32 %v5087_v18, %v3249_v6 }
 0x36d   : > { %3387 = vst.msk [vmem:[%s5096_s28 + $0x3e8] sm:$0xff] %vm3261_vm2, %v3250_v58 }
 0x36e PF: > { %s17_s24 = sadd.s32 1, %s4375_s24  }
 0x36f   : > { %p14_p4 = scmp.ge.s32.totalorder %s17_s24, 4  }
 0x371   :  { %16 = sbr.rel (!%p14_p4) target bundleno = 1 (0x1), region = 78 }

</bundles_post_ra>
